<compile_context>
chip_gen: v6e
topology: v6e:2x2x1
jax: 0.10.0
libtpu: 0.0.40
codegen_flags: <defaults>
</compile_context>

<pallas_src>
import functools

import jax
import jax.numpy as jnp
from jax.experimental import pallas as pl
from jax.experimental.pallas import tpu as pltpu


def _round_up(x, m):
    return (x + m - 1) // m * m


# ----------------------------------------------------------------------------
# Pallas kernel 1: tiled matmul + bias (+ optional ReLU)
# ----------------------------------------------------------------------------
def _matmul_bias_kernel(x_ref, w_ref, b_ref, o_ref, acc_ref, *, apply_relu):
    @pl.when(pl.program_id(2) == 0)
    def _():
        acc_ref[...] = jnp.zeros_like(acc_ref)

    acc_ref[...] += jnp.dot(x_ref[...], w_ref[...],
                            preferred_element_type=jnp.float32)

    @pl.when(pl.program_id(2) == pl.num_programs(2) - 1)
    def _():
        out = acc_ref[...] + b_ref[...]            # (tm, tn) + (1, tn)
        if apply_relu:
            out = jnp.maximum(out, 0.0)
        o_ref[...] = out.astype(o_ref.dtype)


def matmul_bias(x, w, b, *, relu, compute_dtype=jnp.float32,
                tm=256, tk=512, tn=256):
    """x:(M,K) @ w:(K,N) + b:(N,) -> (M,N) f32, optionally ReLU'd.

    Operands are zero-padded so every block is (8,128)-aligned and the output
    last dim is a multiple of 128 (lane-dense stores). Padding is sliced off.
    """
    M, K = x.shape
    K2, N = w.shape
    assert K == K2 and b.shape == (N,)

    tm = min(tm, _round_up(M, 8))
    tk = min(tk, _round_up(K, 128))
    tn = min(tn, _round_up(N, 128))
    Mp, Kp, Np = _round_up(M, tm), _round_up(K, tk), _round_up(N, tn)

    xp = jnp.pad(x, ((0, Mp - M), (0, Kp - K))).astype(compute_dtype)
    wp = jnp.pad(w, ((0, Kp - K), (0, Np - N))).astype(compute_dtype)
    bp = jnp.pad(b, (0, Np - N)).reshape(1, Np).astype(jnp.float32)

    grid = (Mp // tm, Np // tn, Kp // tk)
    bytes_in = xp.size * xp.dtype.itemsize + wp.size * wp.dtype.itemsize
    out = pl.pallas_call(
        functools.partial(_matmul_bias_kernel, apply_relu=relu),
        out_shape=jax.ShapeDtypeStruct((Mp, Np), jnp.float32),
        grid_spec=pltpu.PrefetchScalarGridSpec(
            num_scalar_prefetch=0,
            grid=grid,
            in_specs=[
                pl.BlockSpec((tm, tk), lambda i, j, k: (i, k)),
                pl.BlockSpec((tk, tn), lambda i, j, k: (k, j)),
                pl.BlockSpec((1, tn), lambda i, j, k: (0, j)),
            ],
            out_specs=pl.BlockSpec((tm, tn), lambda i, j, k: (i, j)),
            scratch_shapes=[pltpu.VMEM((tm, tn), jnp.float32)]),
        compiler_params=pltpu.CompilerParams(
            dimension_semantics=("parallel", "parallel", "arbitrary"),
            vmem_limit_bytes=32 * 1024 * 1024),
        cost_estimate=pl.CostEstimate(
            flops=2 * Mp * Kp * Np, transcendentals=0,
            bytes_accessed=bytes_in + Mp * Np * 4),
    )(xp, wp, bp)
    return out[:M, :N]


# ----------------------------------------------------------------------------
# Pallas kernel 2: conv3 (as matmul) + bias + ReLU + fused (conv_mu o adapter)
# ----------------------------------------------------------------------------
def _conv3_tail_kernel(x_ref, w3_ref, b3_ref, wt_ref, bt_ref, o_ref, acc_ref):
    @pl.when(pl.program_id(1) == 0)
    def _():
        acc_ref[...] = jnp.zeros_like(acc_ref)

    acc_ref[...] += jnp.dot(x_ref[...], w3_ref[...],
                            preferred_element_type=jnp.float32)

    @pl.when(pl.program_id(1) == pl.num_programs(1) - 1)
    def _():
        h = jnp.maximum(acc_ref[...] + b3_ref[...], 0.0)          # conv3 + ReLU
        o = jnp.dot(h.astype(wt_ref.dtype), wt_ref[...],
                    preferred_element_type=jnp.float32) + bt_ref[...]
        o_ref[...] = o.astype(o_ref.dtype)                        # mu o adapter


def conv3_tail_matmul(patches, w3, b3, wt, bt, *, compute_dtype=jnp.float32,
                      tm=256, tk=512):
    """relu(patches @ w3 + b3) @ wt + bt inside a single pallas_call."""
    M, K = patches.shape
    K2, N3 = w3.shape
    N32, Z = wt.shape
    assert K == K2 and N3 == N32 and b3.shape == (N3,) and bt.shape == (Z,)

    tm = min(tm, _round_up(M, 8))
    tk = min(tk, _round_up(K, 128))
    Mp, Kp = _round_up(M, tm), _round_up(K, tk)
    N3p, Zp = _round_up(N3, 128), _round_up(Z, 128)

    xp = jnp.pad(patches, ((0, Mp - M), (0, Kp - K))).astype(compute_dtype)
    w3p = jnp.pad(w3, ((0, Kp - K), (0, N3p - N3))).astype(compute_dtype)
    b3p = jnp.pad(b3, (0, N3p - N3)).reshape(1, N3p).astype(jnp.float32)
    wtp = jnp.pad(wt, ((0, N3p - N3), (0, Zp - Z))).astype(compute_dtype)
    btp = jnp.pad(bt, (0, Zp - Z)).reshape(1, Zp).astype(jnp.float32)

    grid = (Mp // tm, Kp // tk)
    out = pl.pallas_call(
        _conv3_tail_kernel,
        out_shape=jax.ShapeDtypeStruct((Mp, Zp), jnp.float32),
        grid_spec=pltpu.PrefetchScalarGridSpec(
            num_scalar_prefetch=0,
            grid=grid,
            in_specs=[
                pl.BlockSpec((tm, tk), lambda i, k: (i, k)),
                pl.BlockSpec((tk, N3p), lambda i, k: (k, 0)),
                pl.BlockSpec((1, N3p), lambda i, k: (0, 0)),
                pl.BlockSpec((N3p, Zp), lambda i, k: (0, 0)),
                pl.BlockSpec((1, Zp), lambda i, k: (0, 0)),
            ],
            out_specs=pl.BlockSpec((tm, Zp), lambda i, k: (i, 0)),
            scratch_shapes=[pltpu.VMEM((tm, N3p), jnp.float32)]),
        compiler_params=pltpu.CompilerParams(
            dimension_semantics=("parallel", "arbitrary"),
            vmem_limit_bytes=32 * 1024 * 1024),
        cost_estimate=pl.CostEstimate(
            flops=2 * Mp * Kp * N3p + 2 * Mp * N3p * Zp, transcendentals=0,
            bytes_accessed=(Mp * Kp + Kp * N3p + N3p * Zp + Mp * Zp) * 4),
    )(xp, w3p, b3p, wtp, btp)
    return out[:M, :Z]


# ----------------------------------------------------------------------------
# Conv2d = pad + im2col (JAX glue) + Pallas matmul (hot path)
# ----------------------------------------------------------------------------
def _im2col(x, kh, kw, sh, sw):
    """x:(N,H,W,C) -> ((N*OH*OW, KH*KW*C), OH, OW); patch order (kh, kw, c)."""
    n, h, w, c = x.shape
    oh = (h - kh) // sh + 1
    ow = (w - kw) // sw + 1
    if oh == 1 and ow == 1 and kh == h and kw == w:
        # Kernel covers the whole (padded) spatial extent: im2col == reshape.
        return x.reshape(n, kh * kw * c), 1, 1
    cols = []
    for i in range(kh):
        for j in range(kw):
            cols.append(x[:, i:i + sh * oh:sh, j:j + sw * ow:sw, :])
    p = jnp.stack(cols, axis=3)                  # (N, OH, OW, KH*KW, C)
    return p.reshape(n * oh * ow, kh * kw * c), oh, ow


def conv2d(x, w_mat, b, kh, kw, stride, pad=None, relu=False,
           compute_dtype=jnp.float32):
    """x:(N,H,W,C) NHWC; w_mat:(KH*KW*CIN, COUT) pre-packed; b:(COUT,)."""
    if pad is not None:
        left, right, top, bottom = pad           # nn.ZeroPad2d convention
        x = jnp.pad(x, ((0, 0), (top, bottom), (left, right), (0, 0)))
    n = x.shape[0]
    # NOTE: patch extraction stays in plain JAX (pad + strided slices); fully
    # in-kernel im2col would need strided/Element BlockSpecs and is left out.
    patches, oh, ow = _im2col(x, kh, kw, *stride)
    y = matmul_bias(patches, w_mat, b, relu=relu, compute_dtype=compute_dtype)
    return y.reshape(n, oh, ow, w_mat.shape[1])


# ----------------------------------------------------------------------------
# Deterministic parameter init (PyTorch-default-style uniform, synthetic),
# pre-packed to matmul layout, conv_mu o adapter fused algebraically.
# ----------------------------------------------------------------------------
def _conv_params(key, cout, cin, kh, kw):
    kw_key, kb_key = jax.random.split(key)
    bound = float(cin * kh * kw) ** -0.5
    w = jax.random.uniform(kw_key, (cout, cin, kh, kw), jnp.float32, -bound, bound)
    b = jax.random.uniform(kb_key, (cout,), jnp.float32, -bound, bound)
    return w, b


def _pack(w):
    """(COUT,CIN,KH,KW) PyTorch conv weight -> (KH*KW*CIN, COUT) matmul weight."""
    cout, cin, kh, kw = w.shape
    return jnp.transpose(w, (2, 3, 1, 0)).reshape(kh * kw * cin, cout)


def init_encoder_params(key, channel_in=3, ch=16, z=64):
    keys = jax.random.split(key, 5)
    w1, b1 = _conv_params(keys[0], ch, channel_in, 8, 8)
    w2, b2 = _conv_params(keys[1], ch * 2, ch, 4, 4)
    w3, b3 = _conv_params(keys[2], ch * 32, ch * 2, 11, 11)
    wmu, bmu = _conv_params(keys[3], z, ch * 32, 1, 1)
    wad, bad = _conv_params(keys[4], z, z, 1, 1)

    # conv_mu and adapter are both 1x1 with no nonlinearity in between:
    #   (h @ Wmu + bmu) @ Wad + bad == h @ (Wmu @ Wad) + (bmu @ Wad + bad)
    wmu_m, wad_m = _pack(wmu), _pack(wad)
    w_tail = wmu_m @ wad_m                       # (32*ch, z)
    b_tail = bmu @ wad_m + bad                   # (z,)
    return {
        "conv1": (_pack(w1), b1),
        "conv2": (_pack(w2), b2),
        "conv3": (_pack(w3), b3),
        "tail": (w_tail, b_tail),
    }


# ----------------------------------------------------------------------------
# Encoder.forward (no /div in the subclass)
# ----------------------------------------------------------------------------
def encoder_forward(params, x_nchw, *, compute_dtype=jnp.float32):
    """compute_dtype=jnp.bfloat16 gives ~2x MXU throughput on v6e/v7x while
    keeping f32 accumulation and an f32 bias/ReLU epilogue (v5e-safe)."""
    x = jnp.transpose(x_nchw, (0, 2, 3, 1))                        # NCHW->NHWC
    w, b = params["conv1"]
    x = conv2d(x, w, b, 8, 8, (4, 4), pad=(2, 2, 2, 2), relu=True,
               compute_dtype=compute_dtype)                        # Conv 8x8/4
    w, b = params["conv2"]
    x = conv2d(x, w, b, 4, 4, (2, 2), pad=(1, 2, 1, 2), relu=True,
               compute_dtype=compute_dtype)                        # Conv 4x4/2
    # conv3 (11x11/1) + ReLU + fused conv_mu/adapter in one pallas_call.
    w3, b3 = params["conv3"]
    wt, bt = params["tail"]
    n = x.shape[0]
    patches, oh, ow = _im2col(x, 11, 11, 1, 1)
    y = conv3_tail_matmul(patches, w3, b3, wt, bt, compute_dtype=compute_dtype)
    y = y.reshape(n, oh, ow, y.shape[1])
    return jnp.transpose(y, (0, 3, 1, 2))                          # NHWC->NCHW


if __name__ == "__main__":
    key = jax.random.PRNGKey(0)
    pkey, xkey = jax.random.split(key)

    # Small config consistent with the module: channel_in=3, ch=4 (so 2ch=8,
    # 32ch=128), z=16.  Spatial must be 84x84 (Atari) so the 8x8/4, 4x4/2 and
    # 11x11/1 conv stack lands on a 1x1 feature map, exactly as in PyTorch.
    channel_in, ch, z = 3, 4, 16
    params = init_encoder_params(pkey, channel_in=channel_in, ch=ch, z=z)

    x = jax.random.uniform(xkey, (2, channel_in, 84, 84), jnp.float32)

    out = jax.jit(encoder_forward)(params, x)
    out = jax.block_until_ready(out)
    assert out.shape == (2, z, 1, 1), out.shape
    assert out.dtype == jnp.float32
    print("KERNEL_OK")
</pallas_src>

<mosaic_0001>
module attributes {stable_mosaic.version = 11 : i64} {
  func.func @_matmul_bias_kernel(%arg0: i32, %arg1: i32, %arg2: i32, %arg3: memref<256x256xf32, #tpu.memory_space<vmem>>, %arg4: memref<256x128xf32, #tpu.memory_space<vmem>>, %arg5: memref<1x128xf32, #tpu.memory_space<vmem>>, %arg6: memref<256x128xf32, #tpu.memory_space<vmem>>, %arg7: memref<256x128xf32, #tpu.memory_space<vmem>>) attributes {dimension_semantics = [#tpu.dimension_semantics<parallel>, #tpu.dimension_semantics<parallel>, #tpu.dimension_semantics<arbitrary>], iteration_bounds = array<i64: 4, 1, 1>, scalar_prefetch = 0 : i64, scratch_operands = 1 : i64, tpu.core_type = #tpu.core_type<tc>, window_params = [{transform_indices = @transform_0, window_bounds = array<i64: 256, 256>}, {transform_indices = @transform_1, window_bounds = array<i64: 256, 128>}, {transform_indices = @transform_2, window_bounds = array<i64: 1, 128>}, {transform_indices = @transform_3, window_bounds = array<i64: 256, 128>}]} {
    %c0_i32 = arith.constant 0 : i32
    %0 = arith.cmpi eq, %arg2, %c0_i32 : i32
    %1 = arith.extui %0 : i1 to i32
    %c0_i32_0 = arith.constant 0 : i32
    %2 = arith.cmpi ne, %1, %c0_i32_0 : i32
    scf.if %2 {
      %cst_10 = arith.constant 0.000000e+00 : f32
      %12 = vector.broadcast %cst_10 : f32 to vector<256x128xf32>
      %c0_11 = arith.constant 0 : index
      %c0_12 = arith.constant 0 : index
      %13 = vector.load %arg7[%c0_11, %c0_12] : memref<256x128xf32, #tpu.memory_space<vmem>>, vector<256x128xf32>
      tpu.vector_store %arg7[%c0_11, %c0_12], %12 {strides = array<i32>} : memref<256x128xf32, #tpu.memory_space<vmem>>, vector<256x128xf32>,
    } else {
    }
    %c0 = arith.constant 0 : index
    %c0_1 = arith.constant 0 : index
    %3 = vector.load %arg7[%c0, %c0_1] : memref<256x128xf32, #tpu.memory_space<vmem>>, vector<256x128xf32>
    %c0_2 = arith.constant 0 : index
    %c0_3 = arith.constant 0 : index
    %4 = vector.load %arg3[%c0_2, %c0_3] : memref<256x256xf32, #tpu.memory_space<vmem>>, vector<256x256xf32>
    %c0_4 = arith.constant 0 : index
    %c0_5 = arith.constant 0 : index
    %5 = vector.load %arg4[%c0_4, %c0_5] : memref<256x128xf32, #tpu.memory_space<vmem>>, vector<256x128xf32>
    %cst = arith.constant dense<0.000000e+00> : vector<256x128xf32>
    %6 = tpu.matmul %4, %5, %cst {dimension_numbers = #tpu.dot_dimension_numbers<[1], [0], [0], [1], [0, 0, 1, 1], [], []>} : vector<256x256xf32>, vector<256x128xf32>, vector<256x128xf32> -> vector<256x128xf32>
    %7 = arith.addf %3, %6 : vector<256x128xf32>
    %c0_6 = arith.constant 0 : index
    %c0_7 = arith.constant 0 : index
    %8 = vector.load %arg7[%c0_6, %c0_7] : memref<256x128xf32, #tpu.memory_space<vmem>>, vector<256x128xf32>
    tpu.vector_store %arg7[%c0_6, %c0_7], %7 {strides = array<i32>} : memref<256x128xf32, #tpu.memory_space<vmem>>, vector<256x128xf32>,
    %c0_i32_8 = arith.constant 0 : i32
    %9 = arith.cmpi eq, %arg2, %c0_i32_8 : i32
    %10 = arith.extui %9 : i1 to i32
    %c0_i32_9 = arith.constant 0 : i32
    %11 = arith.cmpi ne, %10, %c0_i32_9 : i32
    scf.if %11 {
      %c0_10 = arith.constant 0 : index
      %c0_11 = arith.constant 0 : index
      %12 = vector.load %arg7[%c0_10, %c0_11] : memref<256x128xf32, #tpu.memory_space<vmem>>, vector<256x128xf32>
      %c0_12 = arith.constant 0 : index
      %c0_13 = arith.constant 0 : index
      %13 = vector.load %arg5[%c0_12, %c0_13] : memref<1x128xf32, #tpu.memory_space<vmem>>, vector<1x128xf32>
      %14 = vector.broadcast %13 : vector<1x128xf32> to vector<256x128xf32>
      %15 = arith.addf %12, %14 : vector<256x128xf32>
      %cst_14 = arith.constant 0.000000e+00 : f32
      %16 = vector.broadcast %cst_14 : f32 to vector<256x128xf32>
      %17 = arith.maximumf %15, %16 : vector<256x128xf32>
      %c0_15 = arith.constant 0 : index
      %c0_16 = arith.constant 0 : index
      %18 = vector.load %arg6[%c0_15, %c0_16] : memref<256x128xf32, #tpu.memory_space<vmem>>, vector<256x128xf32>
      tpu.vector_store %arg6[%c0_15, %c0_16], %17 {strides = array<i32>} : memref<256x128xf32, #tpu.memory_space<vmem>>, vector<256x128xf32>,
    } else {
    }
    return
  }
  func.func @transform_0(%arg0: i32, %arg1: i32, %arg2: i32) -> (i32, i32) {
    %c0_i32 = arith.constant 0 : i32
    return %arg0, %arg2 : i32, i32
  }
  func.func @transform_1(%arg0: i32, %arg1: i32, %arg2: i32) -> (i32, i32) {
    %c0_i32 = arith.constant 0 : i32
    return %arg2, %arg1 : i32, i32
  }
  func.func @transform_2(%arg0: i32, %arg1: i32, %arg2: i32) -> (i32, i32) {
    %c0_i32 = arith.constant 0 : i32
    %c0_i32_0 = arith.constant 0 : i32
    return %c0_i32, %arg1 : i32, i32
  }
  func.func @transform_3(%arg0: i32, %arg1: i32, %arg2: i32) -> (i32, i32) {
    %c0_i32 = arith.constant 0 : i32
    return %arg0, %arg1 : i32, i32
  }
}

module attributes {stable_mosaic.version = 11 : i64} {
  func.func @_matmul_bias_kernel(%arg0: i32, %arg1: i32, %arg2: i32, %arg3: memref<248x128xf32, #tpu.memory_space<vmem>>, %arg4: memref<128x128xf32, #tpu.memory_space<vmem>>, %arg5: memref<1x128xf32, #tpu.memory_space<vmem>>, %arg6: memref<248x128xf32, #tpu.memory_space<vmem>>, %arg7: memref<248x128xf32, #tpu.memory_space<vmem>>) attributes {dimension_semantics = [#tpu.dimension_semantics<parallel>, #tpu.dimension_semantics<parallel>, #tpu.dimension_semantics<arbitrary>], iteration_bounds = array<i64: 1, 1, 1>, scalar_prefetch = 0 : i64, scratch_operands = 1 : i64, tpu.core_type = #tpu.core_type<tc>, window_params = [{transform_indices = @transform_0, window_bounds = array<i64: 248, 128>}, {transform_indices = @transform_1, window_bounds = array<i64: 128, 128>}, {transform_indices = @transform_2, window_bounds = array<i64: 1, 128>}, {transform_indices = @transform_3, window_bounds = array<i64: 248, 128>}]} {
    %c0_i32 = arith.constant 0 : i32
    %0 = arith.cmpi eq, %arg2, %c0_i32 : i32
    %1 = arith.extui %0 : i1 to i32
    %c0_i32_0 = arith.constant 0 : i32
    %2 = arith.cmpi ne, %1, %c0_i32_0 : i32
    scf.if %2 {
      %cst_10 = arith.constant 0.000000e+00 : f32
      %12 = vector.broadcast %cst_10 : f32 to vector<248x128xf32>
      %c0_11 = arith.constant 0 : index
      %c0_12 = arith.constant 0 : index
      %13 = vector.load %arg7[%c0_11, %c0_12] : memref<248x128xf32, #tpu.memory_space<vmem>>, vector<248x128xf32>
      tpu.vector_store %arg7[%c0_11, %c0_12], %12 {strides = array<i32>} : memref<248x128xf32, #tpu.memory_space<vmem>>, vector<248x128xf32>,
    } else {
    }
    %c0 = arith.constant 0 : index
    %c0_1 = arith.constant 0 : index
    %3 = vector.load %arg7[%c0, %c0_1] : memref<248x128xf32, #tpu.memory_space<vmem>>, vector<248x128xf32>
    %c0_2 = arith.constant 0 : index
    %c0_3 = arith.constant 0 : index
    %4 = vector.load %arg3[%c0_2, %c0_3] : memref<248x128xf32, #tpu.memory_space<vmem>>, vector<248x128xf32>
    %c0_4 = arith.constant 0 : index
    %c0_5 = arith.constant 0 : index
    %5 = vector.load %arg4[%c0_4, %c0_5] : memref<128x128xf32, #tpu.memory_space<vmem>>, vector<128x128xf32>
    %cst = arith.constant dense<0.000000e+00> : vector<248x128xf32>
    %6 = tpu.matmul %4, %5, %cst {dimension_numbers = #tpu.dot_dimension_numbers<[1], [0], [0], [1], [0, 0, 1, 1], [], []>} : vector<248x128xf32>, vector<128x128xf32>, vector<248x128xf32> -> vector<248x128xf32>
    %7 = arith.addf %3, %6 : vector<248x128xf32>
    %c0_6 = arith.constant 0 : index
    %c0_7 = arith.constant 0 : index
    %8 = vector.load %arg7[%c0_6, %c0_7] : memref<248x128xf32, #tpu.memory_space<vmem>>, vector<248x128xf32>
    tpu.vector_store %arg7[%c0_6, %c0_7], %7 {strides = array<i32>} : memref<248x128xf32, #tpu.memory_space<vmem>>, vector<248x128xf32>,
    %c0_i32_8 = arith.constant 0 : i32
    %9 = arith.cmpi eq, %arg2, %c0_i32_8 : i32
    %10 = arith.extui %9 : i1 to i32
    %c0_i32_9 = arith.constant 0 : i32
    %11 = arith.cmpi ne, %10, %c0_i32_9 : i32
    scf.if %11 {
      %c0_10 = arith.constant 0 : index
      %c0_11 = arith.constant 0 : index
      %12 = vector.load %arg7[%c0_10, %c0_11] : memref<248x128xf32, #tpu.memory_space<vmem>>, vector<248x128xf32>
      %c0_12 = arith.constant 0 : index
      %c0_13 = arith.constant 0 : index
      %13 = vector.load %arg5[%c0_12, %c0_13] : memref<1x128xf32, #tpu.memory_space<vmem>>, vector<1x128xf32>
      %14 = vector.broadcast %13 : vector<1x128xf32> to vector<248x128xf32>
      %15 = arith.addf %12, %14 : vector<248x128xf32>
      %cst_14 = arith.constant 0.000000e+00 : f32
      %16 = vector.broadcast %cst_14 : f32 to vector<248x128xf32>
      %17 = arith.maximumf %15, %16 : vector<248x128xf32>
      %c0_15 = arith.constant 0 : index
      %c0_16 = arith.constant 0 : index
      %18 = vector.load %arg6[%c0_15, %c0_16] : memref<248x128xf32, #tpu.memory_space<vmem>>, vector<248x128xf32>
      tpu.vector_store %arg6[%c0_15, %c0_16], %17 {strides = array<i32>} : memref<248x128xf32, #tpu.memory_space<vmem>>, vector<248x128xf32>,
    } else {
    }
    return
  }
  func.func @transform_0(%arg0: i32, %arg1: i32, %arg2: i32) -> (i32, i32) {
    %c0_i32 = arith.constant 0 : i32
    return %arg0, %arg2 : i32, i32
  }
  func.func @transform_1(%arg0: i32, %arg1: i32, %arg2: i32) -> (i32, i32) {
    %c0_i32 = arith.constant 0 : i32
    return %arg2, %arg1 : i32, i32
  }
  func.func @transform_2(%arg0: i32, %arg1: i32, %arg2: i32) -> (i32, i32) {
    %c0_i32 = arith.constant 0 : i32
    %c0_i32_0 = arith.constant 0 : i32
    return %c0_i32, %arg1 : i32, i32
  }
  func.func @transform_3(%arg0: i32, %arg1: i32, %arg2: i32) -> (i32, i32) {
    %c0_i32 = arith.constant 0 : i32
    return %arg0, %arg1 : i32, i32
  }
}

module attributes {stable_mosaic.version = 11 : i64} {
  func.func @_conv3_tail_kernel(%arg0: i32, %arg1: i32, %arg2: memref<8x512xf32, #tpu.memory_space<vmem>>, %arg3: memref<512x128xf32, #tpu.memory_space<vmem>>, %arg4: memref<1x128xf32, #tpu.memory_space<vmem>>, %arg5: memref<128x128xf32, #tpu.memory_space<vmem>>, %arg6: memref<1x128xf32, #tpu.memory_space<vmem>>, %arg7: memref<8x128xf32, #tpu.memory_space<vmem>>, %arg8: memref<8x128xf32, #tpu.memory_space<vmem>>) attributes {dimension_semantics = [#tpu.dimension_semantics<parallel>, #tpu.dimension_semantics<arbitrary>], iteration_bounds = array<i64: 1, 2>, scalar_prefetch = 0 : i64, scratch_operands = 1 : i64, tpu.core_type = #tpu.core_type<tc>, window_params = [{transform_indices = @transform_0, window_bounds = array<i64: 8, 512>}, {transform_indices = @transform_1, window_bounds = array<i64: 512, 128>}, {pipeline_mode = #tpu.pipeline_mode<synchronous>, transform_indices = @transform_2, window_bounds = array<i64: 1, 128>}, {pipeline_mode = #tpu.pipeline_mode<synchronous>, transform_indices = @transform_3, window_bounds = array<i64: 128, 128>}, {pipeline_mode = #tpu.pipeline_mode<synchronous>, transform_indices = @transform_4, window_bounds = array<i64: 1, 128>}, {transform_indices = @transform_5, window_bounds = array<i64: 8, 128>}]} {
    %c0_i32 = arith.constant 0 : i32
    %0 = arith.cmpi eq, %arg1, %c0_i32 : i32
    %1 = arith.extui %0 : i1 to i32
    %c0_i32_0 = arith.constant 0 : i32
    %2 = arith.cmpi ne, %1, %c0_i32_0 : i32
    scf.if %2 {
      %cst_9 = arith.constant 0.000000e+00 : f32
      %12 = vector.broadcast %cst_9 : f32 to vector<8x128xf32>
      %c0_10 = arith.constant 0 : index
      %c0_11 = arith.constant 0 : index
      %13 = vector.load %arg8[%c0_10, %c0_11] : memref<8x128xf32, #tpu.memory_space<vmem>>, vector<8x128xf32>
      tpu.vector_store %arg8[%c0_10, %c0_11], %12 {strides = array<i32>} : memref<8x128xf32, #tpu.memory_space<vmem>>, vector<8x128xf32>,
    } else {
    }
    %c0 = arith.constant 0 : index
    %c0_1 = arith.constant 0 : index
    %3 = vector.load %arg8[%c0, %c0_1] : memref<8x128xf32, #tpu.memory_space<vmem>>, vector<8x128xf32>
    %c0_2 = arith.constant 0 : index
    %c0_3 = arith.constant 0 : index
    %4 = vector.load %arg2[%c0_2, %c0_3] : memref<8x512xf32, #tpu.memory_space<vmem>>, vector<8x512xf32>
    %c0_4 = arith.constant 0 : index
    %c0_5 = arith.constant 0 : index
    %5 = vector.load %arg3[%c0_4, %c0_5] : memref<512x128xf32, #tpu.memory_space<vmem>>, vector<512x128xf32>
    %cst = arith.constant dense<0.000000e+00> : vector<8x128xf32>
    %6 = tpu.matmul %4, %5, %cst {dimension_numbers = #tpu.dot_dimension_numbers<[1], [0], [0], [1], [0, 0, 1, 1], [], []>} : vector<8x512xf32>, vector<512x128xf32>, vector<8x128xf32> -> vector<8x128xf32>
    %7 = arith.addf %3, %6 : vector<8x128xf32>
    %c0_6 = arith.constant 0 : index
    %c0_7 = arith.constant 0 : index
    %8 = vector.load %arg8[%c0_6, %c0_7] : memref<8x128xf32, #tpu.memory_space<vmem>>, vector<8x128xf32>
    tpu.vector_store %arg8[%c0_6, %c0_7], %7 {strides = array<i32>} : memref<8x128xf32, #tpu.memory_space<vmem>>, vector<8x128xf32>,
    %c1_i32 = arith.constant 1 : i32
    %9 = arith.cmpi eq, %arg1, %c1_i32 : i32
    %10 = arith.extui %9 : i1 to i32
    %c0_i32_8 = arith.constant 0 : i32
    %11 = arith.cmpi ne, %10, %c0_i32_8 : i32
    scf.if %11 {
      %c0_9 = arith.constant 0 : index
      %c0_10 = arith.constant 0 : index
      %12 = vector.load %arg8[%c0_9, %c0_10] : memref<8x128xf32, #tpu.memory_space<vmem>>, vector<8x128xf32>
      %c0_11 = arith.constant 0 : index
      %c0_12 = arith.constant 0 : index
      %13 = vector.load %arg4[%c0_11, %c0_12] : memref<1x128xf32, #tpu.memory_space<vmem>>, vector<1x128xf32>
      %14 = vector.broadcast %13 : vector<1x128xf32> to vector<8x128xf32>
      %15 = arith.addf %12, %14 : vector<8x128xf32>
      %cst_13 = arith.constant 0.000000e+00 : f32
      %16 = vector.broadcast %cst_13 : f32 to vector<8x128xf32>
      %17 = arith.maximumf %15, %16 : vector<8x128xf32>
      %c0_14 = arith.constant 0 : index
      %c0_15 = arith.constant 0 : index
      %18 = vector.load %arg5[%c0_14, %c0_15] : memref<128x128xf32, #tpu.memory_space<vmem>>, vector<128x128xf32>
      %cst_16 = arith.constant dense<0.000000e+00> : vector<8x128xf32>
      %19 = tpu.matmul %17, %18, %cst_16 {dimension_numbers = #tpu.dot_dimension_numbers<[1], [0], [0], [1], [0, 0, 1, 1], [], []>} : vector<8x128xf32>, vector<128x128xf32>, vector<8x128xf32> -> vector<8x128xf32>
      %c0_17 = arith.constant 0 : index
      %c0_18 = arith.constant 0 : index
      %20 = vector.load %arg6[%c0_17, %c0_18] : memref<1x128xf32, #tpu.memory_space<vmem>>, vector<1x128xf32>
      %21 = vector.broadcast %20 : vector<1x128xf32> to vector<8x128xf32>
      %22 = arith.addf %19, %21 : vector<8x128xf32>
      %c0_19 = arith.constant 0 : index
      %c0_20 = arith.constant 0 : index
      %23 = vector.load %arg7[%c0_19, %c0_20] : memref<8x128xf32, #tpu.memory_space<vmem>>, vector<8x128xf32>
      tpu.vector_store %arg7[%c0_19, %c0_20], %22 {strides = array<i32>} : memref<8x128xf32, #tpu.memory_space<vmem>>, vector<8x128xf32>,
    } else {
    }
    return
  }
  func.func @transform_0(%arg0: i32, %arg1: i32) -> (i32, i32) {
    %c0_i32 = arith.constant 0 : i32
    return %arg0, %arg1 : i32, i32
  }
  func.func @transform_1(%arg0: i32, %arg1: i32) -> (i32, i32) {
    %c0_i32 = arith.constant 0 : i32
    %c0_i32_0 = arith.constant 0 : i32
    return %arg1, %c0_i32 : i32, i32
  }
  func.func @transform_2(%arg0: i32, %arg1: i32) -> (i32, i32) {
    %c0_i32 = arith.constant 0 : i32
    %c0_i32_0 = arith.constant 0 : i32
    %c0_i32_1 = arith.constant 0 : i32
    return %c0_i32, %c0_i32_0 : i32, i32
  }
  func.func @transform_3(%arg0: i32, %arg1: i32) -> (i32, i32) {
    %c0_i32 = arith.constant 0 : i32
    %c0_i32_0 = arith.constant 0 : i32
    %c0_i32_1 = arith.constant 0 : i32
    return %c0_i32, %c0_i32_0 : i32, i32
  }
  func.func @transform_4(%arg0: i32, %arg1: i32) -> (i32, i32) {
    %c0_i32 = arith.constant 0 : i32
    %c0_i32_0 = arith.constant 0 : i32
    %c0_i32_1 = arith.constant 0 : i32
    return %c0_i32, %c0_i32_0 : i32, i32
  }
  func.func @transform_5(%arg0: i32, %arg1: i32) -> (i32, i32) {
    %c0_i32 = arith.constant 0 : i32
    %c0_i32_0 = arith.constant 0 : i32
    return %arg0, %c0_i32 : i32, i32
  }
}

</mosaic_0001>

<bundles_post_ra>
// kernel: encoder_forward.3
= control target key start
LH: loop header
LB: loop body
LE: loop exit
PB: predicated region body
PF: predicated region fallthrough
CT: control target
= control target key end

     0   :  { %s1122_s12 = smov 0   ;;  %s1124_s13 = smov 0   ;;  %s1459_s0 = inlined_call_operand.vmem [shape: f32[1024,256], index: 0, kind: input, shape index: {}]   ;;  %s1460_s1 = inlined_call_operand.vmem [shape: f32[256,128], index: 1, kind: input, shape index: {}]   ;;  %s1461_s2 = inlined_call_operand.vmem [shape: f32[1,128], index: 2, kind: input, shape index: {}]   ;;  %s1462_s3 = inlined_call_operand.vmem [shape: f32[1024,128], index: 3, kind: output, shape index: {}]  }
   0x1   :  { %s1126_s14 = smov 0  }
   0x2 LB: > { %s32_s15 = sadd.s32 1, %s1095_s13  ;;  %p978_p0 = scmp.ge.s32.totalorder %s1099_s14, 1  ;;  %s1099_s14 = sphi %s1126_s14, %s13_s14   ;;  %s1095_s13 = sphi %s1124_s13, %s1464_s13   ;;  %s1091_s12 = sphi %s1122_s12, %s1463_s12  }
   0x3   : > { %p34_p1 = scmp.ge.s32.totalorder %s32_s15, 4  ;;  %p191_p2 = scmp.lt.s32.totalorder %s1099_s14, 5 }
   0x5   : > { %s1466_s15 = smov (%p34_p1, %s32_s15), 0  ;;  %p192_p3 = pnand %p978_p0, %p191_p2 }
   0x6   : > { %s979_s18 = sshll.u32 (!%p192_p3), %s1091_s12, 5 }
   0x7   : > { %195 = sbr.rel (%p192_p3) target bundleno = 336 (0x150), region = 32  ;;  %p236_p4 = scmp.lt.s32.totalorder (!%p192_p3), %s979_s18, 127 }
   0xc   : > { %v414_v0 = vld [vmem:[%s1460_s1 + $0x78] sm:$0xff]  ;;  %v1101_v1 = vmov 0.0   ;;  %v413_v2 = vld [vmem:[%s1460_s1 + $0x70] sm:$0xff]  ;;  %v412_v3 = vld [vmem:[%s1460_s1 + $0x68] sm:$0xff]  ;;  %s1468_s18 = smov (!%p236_p4, %s979_s18), 127 }
   0xd   : > { %431 = vmatprep.subr.mxu0 %v1101_v1  ;;  %988 = vmatprep.subr.mxu1 %v1101_v1  ;;  %v411_v4 = vld [vmem:[%s1460_s1 + $0x60] sm:$0xff]  ;;  %v410_v5 = vld [vmem:[%s1460_s1 + $0x58] sm:$0xff]  ;;  %v409_v6 = vld [vmem:[%s1460_s1 + $0x50] sm:$0xff]  ;;  %s987_s28 = sshll.u32 %s1468_s18, 4  ;;  %s983_s17 = sshll.u32 %s1468_s18, 3 }
   0xe   : > { %432 = vmatpush1.msra.mxu0 %v414_v0  ;;  %1020 = vmatpush1.msra.mxu1 %v414_v0  ;;  %v408_v7 = vld [vmem:[%s1460_s1 + $0x48] sm:$0xff]  ;;  %v407_v8 = vld [vmem:[%s1460_s1 + $0x40] sm:$0xff]  ;;  %v406_v9 = vld [vmem:[%s1460_s1 + $0x38] sm:$0xff]  ;;  %s1302_s8 = scalar_lea.vmem %s1459_s0, %s987_s28  ;;  %s1386_s21 = scalar_lea.vmem %s1462_s3, %s983_s17 }
   0xf   : > { %433 = vmatprep.subr.mxu0 %v1101_v1  ;;  %989 = vmatprep.subr.mxu1 %v1101_v1  ;;  %v405_v10 = vld [vmem:[%s1460_s1 + $0x30] sm:$0xff]  ;;  %v404_v11 = vld [vmem:[%s1460_s1 + $0x28] sm:$0xff]  ;;  %v403_v12 = vld [vmem:[%s1460_s1 + $0x20] sm:$0xff] }
  0x10   : > { %434 = vmatpush1.msra.mxu0 %v413_v2  ;;  %1021 = vmatpush1.msra.mxu1 %v413_v2  ;;  %v402_v13 = vld [vmem:[%s1460_s1 + $0x18] sm:$0xff]  ;;  %v401_v14 = vld [vmem:[%s1460_s1 + $0x10] sm:$0xff]  ;;  %v400_v15 = vld [vmem:[%s1460_s1 + $0x8] sm:$0xff] }
  0x11   : > { %435 = vmatprep.subr.mxu0 %v1101_v1  ;;  %990 = vmatprep.subr.mxu1 %v1101_v1  ;;  %v399_v16 = vld [vmem:[%s1460_s1] sm:$0xff]  ;;  %v430_v17 = vld [vmem:[%s1460_s1 + $0xf8] sm:$0xff]  ;;  %v429_v18 = vld [vmem:[%s1460_s1 + $0xf0] sm:$0xff] }
  0x12   : > { %436 = vmatpush1.msra.mxu0 %v412_v3  ;;  %1022 = vmatpush1.msra.mxu1 %v412_v3  ;;  %v428_v19 = vld [vmem:[%s1460_s1 + $0xe8] sm:$0xff]  ;;  %v427_v20 = vld [vmem:[%s1460_s1 + $0xe0] sm:$0xff]  ;;  %v426_v21 = vld [vmem:[%s1460_s1 + $0xd8] sm:$0xff] }
  0x13   : > { %437 = vmatprep.subr.mxu0 %v1101_v1  ;;  %991 = vmatprep.subr.mxu1 %v1101_v1  ;;  %v425_v22 = vld [vmem:[%s1460_s1 + $0xd0] sm:$0xff]  ;;  %v424_v23 = vld [vmem:[%s1460_s1 + $0xc8] sm:$0xff]  ;;  %v423_v24 = vld [vmem:[%s1460_s1 + $0xc0] sm:$0xff] }
  0x14   : > { %438 = vmatpush1.msra.mxu0 %v411_v4  ;;  %1023 = vmatpush1.msra.mxu1 %v411_v4  ;;  %v422_v25 = vld [vmem:[%s1460_s1 + $0xb8] sm:$0xff]  ;;  %v421_v26 = vld [vmem:[%s1460_s1 + $0xb0] sm:$0xff]  ;;  %v420_v27 = vld [vmem:[%s1460_s1 + $0xa8] sm:$0xff] }
  0x15   : > { %439 = vmatprep.subr.mxu0 %v1101_v1  ;;  %992 = vmatprep.subr.mxu1 %v1101_v1  ;;  %v419_v28 = vld [vmem:[%s1460_s1 + $0xa0] sm:$0xff]  ;;  %v418_v29 = vld [vmem:[%s1460_s1 + $0x98] sm:$0xff]  ;;  %v417_v30 = vld [vmem:[%s1460_s1 + $0x90] sm:$0xff] }
  0x16   : > { %440 = vmatpush1.msra.mxu0 %v410_v5  ;;  %1024 = vmatpush1.msra.mxu1 %v410_v5  ;;  %v416_v31 = vld [vmem:[%s1460_s1 + $0x88] sm:$0xff]  ;;  %v415_v32 = vld [vmem:[%s1460_s1 + $0x80] sm:$0xff]  ;;  %v338_v37 = vld [vmem:[%s1302_s8 + $0x18] sm:$0xff] }
  0x17   : > { %441 = vmatprep.subr.mxu0 %v1101_v1  ;;  %993 = vmatprep.subr.mxu1 %v1101_v1  ;;  %v336_v33 = vld [vmem:[%s1302_s8 + $0x8] sm:$0xff]  ;;  %v335_v35 = vld [vmem:[%s1302_s8] sm:$0xff]  ;;  %v370_v38 = vld [vmem:[%s1302_s8 + $0x118] sm:$0xff] }
  0x18   : > { %442 = vmatpush1.msra.mxu0 %v409_v6  ;;  %1025 = vmatpush1.msra.mxu1 %v409_v6  ;;  %v368_v34 = vld [vmem:[%s1302_s8 + $0x108] sm:$0xff]  ;;  %v367_v36 = vld [vmem:[%s1302_s8 + $0x100] sm:$0xff]  ;;  %v337_v39 = vld [vmem:[%s1302_s8 + $0x10] sm:$0xff] }
  0x19   : > { %443 = vmatprep.subr.mxu0 %v1101_v1  ;;  %994 = vmatprep.subr.mxu1 %v1101_v1  ;;  %v369_v40 = vld [vmem:[%s1302_s8 + $0x110] sm:$0xff]  ;;  %v340_v41 = vld [vmem:[%s1302_s8 + $0x28] sm:$0xff]  ;;  %v339_v43 = vld [vmem:[%s1302_s8 + $0x20] sm:$0xff] }
  0x1a   : > { %444 = vmatpush1.msra.mxu0 %v408_v7  ;;  %1026 = vmatpush1.msra.mxu1 %v408_v7  ;;  %v372_v42 = vld [vmem:[%s1302_s8 + $0x128] sm:$0xff]  ;;  %v371_v44 = vld [vmem:[%s1302_s8 + $0x120] sm:$0xff]  ;;  %v342_v45 = vld [vmem:[%s1302_s8 + $0x38] sm:$0xff] }
  0x1b   : > { %445 = vmatprep.subr.mxu0 %v1101_v1  ;;  %995 = vmatprep.subr.mxu1 %v1101_v1  ;;  %v374_v46 = vld [vmem:[%s1302_s8 + $0x138] sm:$0xff]  ;;  %v341_v47 = vld [vmem:[%s1302_s8 + $0x30] sm:$0xff]  ;;  %v344_v49 = vld [vmem:[%s1302_s8 + $0x48] sm:$0xff] }
  0x1c   : > { %446 = vmatpush1.msra.mxu0 %v407_v8  ;;  %1027 = vmatpush1.msra.mxu1 %v407_v8  ;;  %v373_v48 = vld [vmem:[%s1302_s8 + $0x130] sm:$0xff]  ;;  %v376_v50 = vld [vmem:[%s1302_s8 + $0x148] sm:$0xff]  ;;  %v343_v51 = vld [vmem:[%s1302_s8 + $0x40] sm:$0xff] }
  0x1d   : > { %447 = vmatprep.subr.mxu0 %v1101_v1  ;;  %996 = vmatprep.subr.mxu1 %v1101_v1  ;;  %v375_v52 = vld [vmem:[%s1302_s8 + $0x140] sm:$0xff]  ;;  %v346_v53 = vld [vmem:[%s1302_s8 + $0x58] sm:$0xff]  ;;  %v345_v55 = vld [vmem:[%s1302_s8 + $0x50] sm:$0xff] }
  0x1e   : > { %448 = vmatpush1.msra.mxu0 %v406_v9  ;;  %1028 = vmatpush1.msra.mxu1 %v406_v9  ;;  %v378_v54 = vld [vmem:[%s1302_s8 + $0x158] sm:$0xff]  ;;  %v377_v56 = vld [vmem:[%s1302_s8 + $0x150] sm:$0xff]  ;;  %v348_v57 = vld [vmem:[%s1302_s8 + $0x68] sm:$0xff] }
  0x1f   : > { %449 = vmatprep.subr.mxu0 %v1101_v1  ;;  %997 = vmatprep.subr.mxu1 %v1101_v1  ;;  %v380_v58 = vld [vmem:[%s1302_s8 + $0x168] sm:$0xff]  ;;  %v347_v59 = vld [vmem:[%s1302_s8 + $0x60] sm:$0xff]  ;;  %v350_v61 = vld [vmem:[%s1302_s8 + $0x78] sm:$0xff] }
  0x20   : > { %450 = vmatpush1.msra.mxu0 %v405_v10  ;;  %1029 = vmatpush1.msra.mxu1 %v405_v10  ;;  %v379_v60 = vld [vmem:[%s1302_s8 + $0x160] sm:$0xff]  ;;  %v382_v62 = vld [vmem:[%s1302_s8 + $0x178] sm:$0xff]  ;;  %v349_v63 = vld [vmem:[%s1302_s8 + $0x70] sm:$0xff] }
  0x21   : > { %451 = vmatprep.subr.mxu0 %v1101_v1  ;;  %998 = vmatprep.subr.mxu1 %v1101_v1  ;;  %v381_v0 = vld [vmem:[%s1302_s8 + $0x170] sm:$0xff]  ;;  %v384_v2 = vld [vmem:[%s1302_s8 + $0x188] sm:$0xff]  ;;  %v351_v3 = vld [vmem:[%s1302_s8 + $0x80] sm:$0xff] }
  0x22   : > { %452 = vmatpush1.msra.mxu0 %v404_v11  ;;  %1030 = vmatpush1.msra.mxu1 %v404_v11  ;;  %v383_v4 = vld [vmem:[%s1302_s8 + $0x180] sm:$0xff]  ;;  %v354_v5 = vld [vmem:[%s1302_s8 + $0x98] sm:$0xff]  ;;  %v353_v7 = vld [vmem:[%s1302_s8 + $0x90] sm:$0xff] }
  0x23   : > { %453 = vmatprep.subr.mxu0 %v1101_v1  ;;  %999 = vmatprep.subr.mxu1 %v1101_v1  ;;  %v386_v6 = vld [vmem:[%s1302_s8 + $0x198] sm:$0xff]  ;;  %v385_v8 = vld [vmem:[%s1302_s8 + $0x190] sm:$0xff]  ;;  %v356_v9 = vld [vmem:[%s1302_s8 + $0xa8] sm:$0xff] }
  0x24   : > { %454 = vmatpush1.msra.mxu0 %v403_v12  ;;  %1031 = vmatpush1.msra.mxu1 %v403_v12  ;;  %v388_v10 = vld [vmem:[%s1302_s8 + $0x1a8] sm:$0xff]  ;;  %v355_v11 = vld [vmem:[%s1302_s8 + $0xa0] sm:$0xff] }
  0x25   : > { %455 = vmatprep.subr.mxu0 %v1101_v1  ;;  %1000 = vmatprep.subr.mxu1 %v1101_v1  ;;  %v387_v12 = vld [vmem:[%s1302_s8 + $0x1a0] sm:$0xff] }
  0x26   : > { %456 = vmatpush1.msra.mxu0 %v402_v13  ;;  %1032 = vmatpush1.msra.mxu1 %v402_v13  ;;  %v358_v13 = vld [vmem:[%s1302_s8 + $0xb8] sm:$0xff] }
  0x27   : > { %457 = vmatprep.subr.mxu0 %v1101_v1  ;;  %1001 = vmatprep.subr.mxu1 %v1101_v1 }
  0x28   : > { %458 = vmatpush1.msra.mxu0 %v401_v14  ;;  %1033 = vmatpush1.msra.mxu1 %v401_v14  ;;  %v390_v14 = vld [vmem:[%s1302_s8 + $0x1b8] sm:$0xff] }
  0x29   : > { %459 = vmatprep.subr.mxu0 %v1101_v1  ;;  %1002 = vmatprep.subr.mxu1 %v1101_v1 }
  0x2a   : > { %460 = vmatpush1.msra.mxu0 %v400_v15  ;;  %1034 = vmatpush1.msra.mxu1 %v400_v15  ;;  %v357_v15 = vld [vmem:[%s1302_s8 + $0xb0] sm:$0xff] }
  0x2b   : > { %461 = vmatprep.subr.mxu0 %v1101_v1  ;;  %1003 = vmatprep.subr.mxu1 %v1101_v1 }
  0x2c   : > { %462 = vmatpush1.msra.mxu0 %v399_v16  ;;  %1035 = vmatpush1.msra.mxu1 %v399_v16  ;;  %v389_v16 = vld [vmem:[%s1302_s8 + $0x1b0] sm:$0xff] }
  0x2d   : > { %463 = vmatprep.subr.mxu0 %v1101_v1  ;;  %1004 = vmatprep.subr.mxu1 %v1101_v1 }
  0x2e   : > { %464 = vmatpush2.msra.mxu0 %v430_v17  ;;  %1036 = vmatpush2.msra.mxu1 %v430_v17  ;;  %v360_v17 = vld [vmem:[%s1302_s8 + $0xc8] sm:$0xff] }
  0x2f   : > { %465 = vmatprep.subr.mxu0 %v1101_v1  ;;  %1005 = vmatprep.subr.mxu1 %v1101_v1 }
  0x30   : > { %466 = vmatpush2.msra.mxu0 %v429_v18  ;;  %1037 = vmatpush2.msra.mxu1 %v429_v18  ;;  %v392_v18 = vld [vmem:[%s1302_s8 + $0x1c8] sm:$0xff] }
  0x31   : > { %467 = vmatprep.subr.mxu0 %v1101_v1  ;;  %1006 = vmatprep.subr.mxu1 %v1101_v1 }
  0x32   : > { %468 = vmatpush2.msra.mxu0 %v428_v19  ;;  %1038 = vmatpush2.msra.mxu1 %v428_v19  ;;  %v359_v19 = vld [vmem:[%s1302_s8 + $0xc0] sm:$0xff] }
  0x33   : > { %469 = vmatprep.subr.mxu0 %v1101_v1  ;;  %1007 = vmatprep.subr.mxu1 %v1101_v1 }
  0x34   : > { %470 = vmatpush2.msra.mxu0 %v427_v20  ;;  %1039 = vmatpush2.msra.mxu1 %v427_v20  ;;  %v391_v20 = vld [vmem:[%s1302_s8 + $0x1c0] sm:$0xff] }
  0x35   : > { %471 = vmatprep.subr.mxu0 %v1101_v1  ;;  %1008 = vmatprep.subr.mxu1 %v1101_v1 }
  0x36   : > { %472 = vmatpush2.msra.mxu0 %v426_v21  ;;  %1040 = vmatpush2.msra.mxu1 %v426_v21  ;;  %v362_v21 = vld [vmem:[%s1302_s8 + $0xd8] sm:$0xff] }
  0x37   : > { %473 = vmatprep.subr.mxu0 %v1101_v1  ;;  %1009 = vmatprep.subr.mxu1 %v1101_v1 }
  0x38   : > { %474 = vmatpush2.msra.mxu0 %v425_v22  ;;  %1041 = vmatpush2.msra.mxu1 %v425_v22  ;;  %v394_v22 = vld [vmem:[%s1302_s8 + $0x1d8] sm:$0xff] }
  0x39   : > { %475 = vmatprep.subr.mxu0 %v1101_v1  ;;  %1010 = vmatprep.subr.mxu1 %v1101_v1 }
  0x3a   : > { %476 = vmatpush2.msra.mxu0 %v424_v23  ;;  %1042 = vmatpush2.msra.mxu1 %v424_v23  ;;  %v361_v23 = vld [vmem:[%s1302_s8 + $0xd0] sm:$0xff] }
  0x3b   : > { %477 = vmatprep.subr.mxu0 %v1101_v1  ;;  %1011 = vmatprep.subr.mxu1 %v1101_v1 }
  0x3c   : > { %478 = vmatpush2.msra.mxu0 %v423_v24  ;;  %1043 = vmatpush2.msra.mxu1 %v423_v24  ;;  %v393_v24 = vld [vmem:[%s1302_s8 + $0x1d0] sm:$0xff] }
  0x3d   : > { %479 = vmatprep.subr.mxu0 %v1101_v1  ;;  %1012 = vmatprep.subr.mxu1 %v1101_v1 }
  0x3e   : > { %480 = vmatpush2.msra.mxu0 %v422_v25  ;;  %1044 = vmatpush2.msra.mxu1 %v422_v25  ;;  %v364_v25 = vld [vmem:[%s1302_s8 + $0xe8] sm:$0xff] }
  0x3f   : > { %481 = vmatprep.subr.mxu0 %v1101_v1  ;;  %1013 = vmatprep.subr.mxu1 %v1101_v1 }
  0x40   : > { %482 = vmatpush2.msra.mxu0 %v421_v26  ;;  %1045 = vmatpush2.msra.mxu1 %v421_v26  ;;  %v396_v26 = vld [vmem:[%s1302_s8 + $0x1e8] sm:$0xff] }
  0x41   : > { %483 = vmatprep.subr.mxu0 %v1101_v1  ;;  %1014 = vmatprep.subr.mxu1 %v1101_v1 }
  0x42   : > { %484 = vmatpush2.msra.mxu0 %v420_v27  ;;  %1046 = vmatpush2.msra.mxu1 %v420_v27  ;;  %v363_v27 = vld [vmem:[%s1302_s8 + $0xe0] sm:$0xff] }
  0x43   : > { %485 = vmatprep.subr.mxu0 %v1101_v1  ;;  %1015 = vmatprep.subr.mxu1 %v1101_v1 }
  0x44   : > { %486 = vmatpush2.msra.mxu0 %v419_v28  ;;  %1047 = vmatpush2.msra.mxu1 %v419_v28  ;;  %v395_v28 = vld [vmem:[%s1302_s8 + $0x1e0] sm:$0xff] }
  0x45   : > { %487 = vmatprep.subr.mxu0 %v1101_v1  ;;  %1016 = vmatprep.subr.mxu1 %v1101_v1 }
  0x46   : > { %488 = vmatpush2.msra.mxu0 %v418_v29  ;;  %1048 = vmatpush2.msra.mxu1 %v418_v29  ;;  %v366_v29 = vld [vmem:[%s1302_s8 + $0xf8] sm:$0xff] }
  0x47   : > { %489 = vmatprep.subr.mxu0 %v1101_v1  ;;  %1017 = vmatprep.subr.mxu1 %v1101_v1 }
  0x48   : > { %490 = vmatpush2.msra.mxu0 %v417_v30  ;;  %1049 = vmatpush2.msra.mxu1 %v417_v30  ;;  %v398_v30 = vld [vmem:[%s1302_s8 + $0x1f8] sm:$0xff] }
  0x49   : > { %491 = vmatprep.subr.mxu0 %v1101_v1  ;;  %1018 = vmatprep.subr.mxu1 %v1101_v1 }
  0x4a   : > { %492 = vmatpush2.msra.mxu0 %v416_v31  ;;  %1050 = vmatpush2.msra.mxu1 %v416_v31  ;;  %v365_v31 = vld [vmem:[%s1302_s8 + $0xf0] sm:$0xff] }
  0x4b   : > { %493 = vmatprep.subr.mxu0 %v1101_v1  ;;  %1019 = vmatprep.subr.mxu1 %v1101_v1  ;;  %v352_v1 = vld [vmem:[%s1302_s8 + $0x88] sm:$0xff] }
  0x4c   : > { %494 = vmatpush2.msra.mxu0 %v415_v32  ;;  %1051 = vmatpush2.msra.mxu1 %v415_v32  ;;  %v397_v32 = vld [vmem:[%s1302_s8 + $0x1f0] sm:$0xff] }
  0x4d   : > { %495 = vmatprep.mubr.f32.mxu0 %v336_v33  ;;  %575 = vmatprep.mubr.f32.mxu1 %v368_v34  ;;  %v1378_v33 = vld [vmem:[%s1461_s2] ss:$0 sm:$0xff] }
  0x4e   : > { %496 = vmatmul.mubr.f32.vlgmr.msra.gmra.mxu0 %v335_v35  ;;  %576 = vmatmul.mubr.f32.vlgmr.msra.gmra.mxu1 %v367_v36 }
  0x4f   : > { %500 = vmatprep.mubr.f32.mxu0 %v338_v37  ;;  %580 = vmatprep.mubr.f32.mxu1 %v370_v38 }
  0x52   : > { %501 = vmatmul.mubr.f32.gmra.mxu0 %v337_v39  ;;  %581 = vmatmul.mubr.f32.gmra.mxu1 %v369_v40 }
  0x53   : > { %505 = vmatprep.mubr.f32.mxu0 %v340_v41  ;;  %585 = vmatprep.mubr.f32.mxu1 %v372_v42 }
  0x56   : > { %506 = vmatmul.mubr.f32.gmra.mxu0 %v339_v43  ;;  %586 = vmatmul.mubr.f32.gmra.mxu1 %v371_v44 }
  0x57   : > { %510 = vmatprep.mubr.f32.mxu0 %v342_v45  ;;  %590 = vmatprep.mubr.f32.mxu1 %v374_v46 }
  0x5a   : > { %511 = vmatmul.mubr.f32.gmra.mxu0 %v341_v47  ;;  %591 = vmatmul.mubr.f32.gmra.mxu1 %v373_v48 }
  0x5b   : > { %515 = vmatprep.mubr.f32.mxu0 %v344_v49  ;;  %595 = vmatprep.mubr.f32.mxu1 %v376_v50 }
  0x5e   : > { %516 = vmatmul.mubr.f32.gmra.mxu0 %v343_v51  ;;  %596 = vmatmul.mubr.f32.gmra.mxu1 %v375_v52 }
  0x5f   : > { %520 = vmatprep.mubr.f32.mxu0 %v346_v53  ;;  %600 = vmatprep.mubr.f32.mxu1 %v378_v54 }
  0x62   : > { %521 = vmatmul.mubr.f32.gmra.mxu0 %v345_v55  ;;  %601 = vmatmul.mubr.f32.gmra.mxu1 %v377_v56 }
  0x63   : > { %525 = vmatprep.mubr.f32.mxu0 %v348_v57  ;;  %605 = vmatprep.mubr.f32.mxu1 %v380_v58 }
  0x66   : > { %526 = vmatmul.mubr.f32.gmra.mxu0 %v347_v59  ;;  %606 = vmatmul.mubr.f32.gmra.mxu1 %v379_v60 }
  0x67   : > { %530 = vmatprep.mubr.f32.mxu0 %v350_v61  ;;  %610 = vmatprep.mubr.f32.mxu1 %v382_v62 }
  0x6a   : > { %531 = vmatmul.mubr.f32.gmra.mxu0 %v349_v63  ;;  %611 = vmatmul.mubr.f32.gmra.mxu1 %v381_v0 }
  0x6b   : > { %535 = vmatprep.mubr.f32.mxu0 %v352_v1  ;;  %615 = vmatprep.mubr.f32.mxu1 %v384_v2 }
  0x6e   : > { %536 = vmatmul.mubr.f32.gmra.mxu0 %v351_v3  ;;  %616 = vmatmul.mubr.f32.gmra.mxu1 %v383_v4 }
  0x6f   : > { %540 = vmatprep.mubr.f32.mxu0 %v354_v5  ;;  %620 = vmatprep.mubr.f32.mxu1 %v386_v6 }
  0x72   : > { %541 = vmatmul.mubr.f32.gmra.mxu0 %v353_v7  ;;  %621 = vmatmul.mubr.f32.gmra.mxu1 %v385_v8 }
  0x73   : > { %545 = vmatprep.mubr.f32.mxu0 %v356_v9  ;;  %625 = vmatprep.mubr.f32.mxu1 %v388_v10 }
  0x76   : > { %546 = vmatmul.mubr.f32.gmra.mxu0 %v355_v11  ;;  %626 = vmatmul.mubr.f32.gmra.mxu1 %v387_v12 }
  0x77   : > { %550 = vmatprep.mubr.f32.mxu0 %v358_v13  ;;  %630 = vmatprep.mubr.f32.mxu1 %v390_v14 }
  0x7a   : > { %551 = vmatmul.mubr.f32.gmra.mxu0 %v357_v15  ;;  %631 = vmatmul.mubr.f32.gmra.mxu1 %v389_v16 }
  0x7b   : > { %555 = vmatprep.mubr.f32.mxu0 %v360_v17  ;;  %635 = vmatprep.mubr.f32.mxu1 %v392_v18 }
  0x7e   : > { %556 = vmatmul.mubr.f32.gmra.mxu0 %v359_v19  ;;  %636 = vmatmul.mubr.f32.gmra.mxu1 %v391_v20 }
  0x7f   : > { %560 = vmatprep.mubr.f32.mxu0 %v362_v21  ;;  %640 = vmatprep.mubr.f32.mxu1 %v394_v22 }
  0x82   : > { %561 = vmatmul.mubr.f32.gmra.mxu0 %v361_v23  ;;  %641 = vmatmul.mubr.f32.gmra.mxu1 %v393_v24 }
  0x83   : > { %565 = vmatprep.mubr.f32.mxu0 %v364_v25  ;;  %645 = vmatprep.mubr.f32.mxu1 %v396_v26 }
  0x86   : > { %566 = vmatmul.mubr.f32.gmra.mxu0 %v363_v27  ;;  %646 = vmatmul.mubr.f32.gmra.mxu1 %v395_v28 }
  0x87   : > { %570 = vmatprep.mubr.f32.mxu0 %v366_v29  ;;  %650 = vmatprep.mubr.f32.mxu1 %v398_v30 }
  0x8a   : > { %571 = vmatmul.mubr.f32.gmra.mxu0 %v365_v31  ;;  %651 = vmatmul.mubr.f32.gmra.mxu1 %v397_v32 }
 0x10e   : > { %v497_v34 = vpop.f32.mrf.mxu0  ;;  %v577_v35 = vpop.f32.mrf.mxu1 }
 0x10f   : > { %v762_v36 = vadd.f32 %v1378_v33, %v497_v34  ;;  %v778_v37 = vadd.f32 %v1378_v33, %v577_v35 }
 0x110   : > { %v499_v38 = vpop.f32.mrf.mxu0  ;;  %v579_v39 = vpop.f32.mrf.mxu1 }
 0x111   : > { %v794_v40 = vmax.f32 %v762_v36, 0.0  ;;  %v810_v41 = vmax.f32 %v778_v37, 0.0 }
 0x112   : > { %v502_v42 = vpop.f32.mrf.mxu0  ;;  %v582_v43 = vpop.f32.mrf.mxu1 }
 0x113   : > { %826 = vst [vmem:[%s1386_s21] sm:$0xff] %v794_v40  ;;  %842 = vst [vmem:[%s1386_s21 + $0x80] sm:$0xff] %v810_v41  ;;  %v763_v44 = vadd.f32 %v1378_v33, %v502_v42  ;;  %v779_v45 = vadd.f32 %v1378_v33, %v582_v43 }
 0x114   : > { %v504_v46 = vpop.f32.mrf.mxu0  ;;  %v584_v47 = vpop.f32.mrf.mxu1 }
 0x115   : > { %v795_v48 = vmax.f32 %v763_v44, 0.0  ;;  %v811_v49 = vmax.f32 %v779_v45, 0.0 }
 0x116   : > { %v507_v50 = vpop.f32.mrf.mxu0  ;;  %v587_v51 = vpop.f32.mrf.mxu1 }
 0x117   : > { %827 = vst [vmem:[%s1386_s21 + $0x8] sm:$0xff] %v795_v48  ;;  %843 = vst [vmem:[%s1386_s21 + $0x88] sm:$0xff] %v811_v49  ;;  %v764_v52 = vadd.f32 %v1378_v33, %v507_v50  ;;  %v780_v53 = vadd.f32 %v1378_v33, %v587_v51 }
 0x118   : > { %v509_v54 = vpop.f32.mrf.mxu0  ;;  %v589_v55 = vpop.f32.mrf.mxu1 }
 0x119   : > { %v796_v56 = vmax.f32 %v764_v52, 0.0  ;;  %v812_v57 = vmax.f32 %v780_v53, 0.0 }
 0x11a   : > { %v512_v58 = vpop.f32.mrf.mxu0  ;;  %v592_v59 = vpop.f32.mrf.mxu1 }
 0x11b   : > { %828 = vst [vmem:[%s1386_s21 + $0x10] sm:$0xff] %v796_v56  ;;  %844 = vst [vmem:[%s1386_s21 + $0x90] sm:$0xff] %v812_v57  ;;  %v765_v60 = vadd.f32 %v1378_v33, %v512_v58  ;;  %v781_v61 = vadd.f32 %v1378_v33, %v592_v59 }
 0x11c   : > { %v514_v62 = vpop.f32.mrf.mxu0  ;;  %v594_v63 = vpop.f32.mrf.mxu1 }
 0x11d   : > { %v797_v0 = vmax.f32 %v765_v60, 0.0  ;;  %v813_v1 = vmax.f32 %v781_v61, 0.0 }
 0x11e   : > { %v517_v2 = vpop.f32.mrf.mxu0  ;;  %v597_v3 = vpop.f32.mrf.mxu1 }
 0x11f   : > { %829 = vst [vmem:[%s1386_s21 + $0x18] sm:$0xff] %v797_v0  ;;  %845 = vst [vmem:[%s1386_s21 + $0x98] sm:$0xff] %v813_v1  ;;  %v766_v4 = vadd.f32 %v1378_v33, %v517_v2  ;;  %v782_v5 = vadd.f32 %v1378_v33, %v597_v3 }
 0x120   : > { %v519_v6 = vpop.f32.mrf.mxu0  ;;  %v599_v7 = vpop.f32.mrf.mxu1 }
 0x121   : > { %v798_v8 = vmax.f32 %v766_v4, 0.0  ;;  %v814_v9 = vmax.f32 %v782_v5, 0.0 }
 0x122   : > { %v522_v10 = vpop.f32.mrf.mxu0  ;;  %v602_v11 = vpop.f32.mrf.mxu1 }
 0x123   : > { %830 = vst [vmem:[%s1386_s21 + $0x20] sm:$0xff] %v798_v8  ;;  %846 = vst [vmem:[%s1386_s21 + $0xa0] sm:$0xff] %v814_v9  ;;  %v767_v12 = vadd.f32 %v1378_v33, %v522_v10  ;;  %v783_v13 = vadd.f32 %v1378_v33, %v602_v11 }
 0x124   : > { %v524_v14 = vpop.f32.mrf.mxu0  ;;  %v604_v15 = vpop.f32.mrf.mxu1 }
 0x125   : > { %v799_v16 = vmax.f32 %v767_v12, 0.0  ;;  %v815_v17 = vmax.f32 %v783_v13, 0.0 }
 0x126   : > { %v527_v18 = vpop.f32.mrf.mxu0  ;;  %v607_v19 = vpop.f32.mrf.mxu1 }
 0x127   : > { %831 = vst [vmem:[%s1386_s21 + $0x28] sm:$0xff] %v799_v16  ;;  %847 = vst [vmem:[%s1386_s21 + $0xa8] sm:$0xff] %v815_v17  ;;  %v768_v20 = vadd.f32 %v1378_v33, %v527_v18  ;;  %v784_v21 = vadd.f32 %v1378_v33, %v607_v19 }
 0x128   : > { %v529_v22 = vpop.f32.mrf.mxu0  ;;  %v609_v23 = vpop.f32.mrf.mxu1 }
 0x129   : > { %v800_v24 = vmax.f32 %v768_v20, 0.0  ;;  %v816_v25 = vmax.f32 %v784_v21, 0.0 }
 0x12a   : > { %v532_v26 = vpop.f32.mrf.mxu0  ;;  %v612_v27 = vpop.f32.mrf.mxu1 }
 0x12b   : > { %832 = vst [vmem:[%s1386_s21 + $0x30] sm:$0xff] %v800_v24  ;;  %848 = vst [vmem:[%s1386_s21 + $0xb0] sm:$0xff] %v816_v25  ;;  %v769_v28 = vadd.f32 %v1378_v33, %v532_v26  ;;  %v785_v29 = vadd.f32 %v1378_v33, %v612_v27 }
 0x12c   : > { %v534_v30 = vpop.f32.mrf.mxu0  ;;  %v614_v31 = vpop.f32.mrf.mxu1 }
 0x12d   : > { %v801_v32 = vmax.f32 %v769_v28, 0.0  ;;  %v817_v34 = vmax.f32 %v785_v29, 0.0 }
 0x12e   : > { %v537_v35 = vpop.f32.mrf.mxu0  ;;  %v617_v36 = vpop.f32.mrf.mxu1 }
 0x12f   : > { %833 = vst [vmem:[%s1386_s21 + $0x38] sm:$0xff] %v801_v32  ;;  %849 = vst [vmem:[%s1386_s21 + $0xb8] sm:$0xff] %v817_v34  ;;  %v770_v37 = vadd.f32 %v1378_v33, %v537_v35  ;;  %v786_v38 = vadd.f32 %v1378_v33, %v617_v36 }
 0x130   : > { %v539_v39 = vpop.f32.mrf.mxu0  ;;  %v619_v40 = vpop.f32.mrf.mxu1 }
 0x131   : > { %v802_v41 = vmax.f32 %v770_v37, 0.0  ;;  %v818_v42 = vmax.f32 %v786_v38, 0.0 }
 0x132   : > { %v542_v43 = vpop.f32.mrf.mxu0  ;;  %v622_v44 = vpop.f32.mrf.mxu1 }
 0x133   : > { %834 = vst [vmem:[%s1386_s21 + $0x40] sm:$0xff] %v802_v41  ;;  %850 = vst [vmem:[%s1386_s21 + $0xc0] sm:$0xff] %v818_v42  ;;  %v771_v45 = vadd.f32 %v1378_v33, %v542_v43  ;;  %v787_v46 = vadd.f32 %v1378_v33, %v622_v44 }
 0x134   : > { %v544_v47 = vpop.f32.mrf.mxu0  ;;  %v624_v48 = vpop.f32.mrf.mxu1 }
 0x135   : > { %v803_v49 = vmax.f32 %v771_v45, 0.0  ;;  %v819_v50 = vmax.f32 %v787_v46, 0.0 }
 0x136   : > { %v547_v51 = vpop.f32.mrf.mxu0  ;;  %v627_v52 = vpop.f32.mrf.mxu1 }
 0x137   : > { %835 = vst [vmem:[%s1386_s21 + $0x48] sm:$0xff] %v803_v49  ;;  %851 = vst [vmem:[%s1386_s21 + $0xc8] sm:$0xff] %v819_v50  ;;  %v772_v53 = vadd.f32 %v1378_v33, %v547_v51  ;;  %v788_v54 = vadd.f32 %v1378_v33, %v627_v52 }
 0x138   : > { %v549_v55 = vpop.f32.mrf.mxu0  ;;  %v629_v56 = vpop.f32.mrf.mxu1 }
 0x139   : > { %v804_v57 = vmax.f32 %v772_v53, 0.0  ;;  %v820_v58 = vmax.f32 %v788_v54, 0.0 }
 0x13a   : > { %v552_v59 = vpop.f32.mrf.mxu0  ;;  %v632_v60 = vpop.f32.mrf.mxu1 }
 0x13b   : > { %836 = vst [vmem:[%s1386_s21 + $0x50] sm:$0xff] %v804_v57  ;;  %852 = vst [vmem:[%s1386_s21 + $0xd0] sm:$0xff] %v820_v58  ;;  %v773_v61 = vadd.f32 %v1378_v33, %v552_v59  ;;  %v789_v62 = vadd.f32 %v1378_v33, %v632_v60 }
 0x13c   : > { %v554_v63 = vpop.f32.mrf.mxu0  ;;  %v634_v0 = vpop.f32.mrf.mxu1 }
 0x13d   : > { %v805_v1 = vmax.f32 %v773_v61, 0.0  ;;  %v821_v2 = vmax.f32 %v789_v62, 0.0 }
 0x13e   : > { %v557_v3 = vpop.f32.mrf.mxu0  ;;  %v637_v4 = vpop.f32.mrf.mxu1 }
 0x13f   : > { %837 = vst [vmem:[%s1386_s21 + $0x58] sm:$0xff] %v805_v1  ;;  %853 = vst [vmem:[%s1386_s21 + $0xd8] sm:$0xff] %v821_v2  ;;  %v774_v5 = vadd.f32 %v1378_v33, %v557_v3  ;;  %v790_v6 = vadd.f32 %v1378_v33, %v637_v4 }
 0x140   : > { %v559_v7 = vpop.f32.mrf.mxu0  ;;  %v639_v8 = vpop.f32.mrf.mxu1 }
 0x141   : > { %v806_v9 = vmax.f32 %v774_v5, 0.0  ;;  %v822_v10 = vmax.f32 %v790_v6, 0.0 }
 0x142   : > { %v562_v11 = vpop.f32.mrf.mxu0  ;;  %v642_v12 = vpop.f32.mrf.mxu1 }
 0x143   : > { %838 = vst [vmem:[%s1386_s21 + $0x60] sm:$0xff] %v806_v9  ;;  %854 = vst [vmem:[%s1386_s21 + $0xe0] sm:$0xff] %v822_v10  ;;  %v775_v13 = vadd.f32 %v1378_v33, %v562_v11  ;;  %v791_v14 = vadd.f32 %v1378_v33, %v642_v12 }
 0x144   : > { %v564_v15 = vpop.f32.mrf.mxu0  ;;  %v644_v16 = vpop.f32.mrf.mxu1 }
 0x145   : > { %v807_v17 = vmax.f32 %v775_v13, 0.0  ;;  %v823_v18 = vmax.f32 %v791_v14, 0.0 }
 0x146   : > { %v567_v19 = vpop.f32.mrf.mxu0  ;;  %v647_v20 = vpop.f32.mrf.mxu1 }
 0x147   : > { %839 = vst [vmem:[%s1386_s21 + $0x68] sm:$0xff] %v807_v17  ;;  %855 = vst [vmem:[%s1386_s21 + $0xe8] sm:$0xff] %v823_v18  ;;  %v776_v21 = vadd.f32 %v1378_v33, %v567_v19  ;;  %v792_v22 = vadd.f32 %v1378_v33, %v647_v20 }
 0x148   : > { %v569_v23 = vpop.f32.mrf.mxu0  ;;  %v649_v24 = vpop.f32.mrf.mxu1 }
 0x149   : > { %v808_v25 = vmax.f32 %v776_v21, 0.0  ;;  %v824_v26 = vmax.f32 %v792_v22, 0.0 }
 0x14a   : > { %v572_v27 = vpop.f32.mrf.mxu0  ;;  %v652_v28 = vpop.f32.mrf.mxu1 }
 0x14b   : > { %840 = vst [vmem:[%s1386_s21 + $0x70] sm:$0xff] %v808_v25  ;;  %856 = vst [vmem:[%s1386_s21 + $0xf0] sm:$0xff] %v824_v26  ;;  %v777_v29 = vadd.f32 %v1378_v33, %v572_v27  ;;  %v793_v30 = vadd.f32 %v1378_v33, %v652_v28 }
 0x14c   : > { %v574_v31 = vpop.f32.mrf.mxu0  ;;  %v654_v32 = vpop.f32.mrf.mxu1 }
 0x14d   : > { %v809_v34 = vmax.f32 %v777_v29, 0.0  ;;  %v825_v35 = vmax.f32 %v793_v30, 0.0 }
 0x14f   : > { %841 = vst [vmem:[%s1386_s21 + $0x78] sm:$0xff] %v809_v34  ;;  %857 = vst [vmem:[%s1386_s21 + $0xf8] sm:$0xff] %v825_v35 }
 0x150 PF: > { %s13_s14 = sadd.s32 1, %s1099_s14   ;;  %s1463_s12 = smov %s1095_s13 }
 0x151   : > { %p10_p5 = scmp.ge.s32.totalorder %s13_s14, 6   ;;  %s1464_s13 = smov %s1466_s15 }
 0x153   :  { %12 = sbr.rel (!%p10_p5) target bundleno = 2 (0x2), region = 76 }

// kernel: encoder_forward.4
= control target key start
LH: loop header
LB: loop body
LE: loop exit
PB: predicated region body
PF: predicated region fallthrough
CT: control target
= control target key end

     0   :  { %v754_v0 = vmov 0.0   ;;  %vm755_vm0 = vmmov 0   ;;  %s1140_s1 = inlined_call_operand.vmem [shape: f32[128,128], index: 1, kind: input, shape index: {}]   ;;  %s1141_s0 = inlined_call_operand.vmem [shape: f32[248,128], index: 0, kind: input, shape index: {}]   ;;  %s1142_s2 = inlined_call_operand.vmem [shape: f32[1,128], index: 2, kind: input, shape index: {}]   ;;  %s1143_s3 = inlined_call_operand.vmem [shape: f32[248,128], index: 3, kind: output, shape index: {}]  }
   0x1   :  { %595 = vmatprep.subr.mxu0 %v754_v0  ;;  %v126_v1 = vld [vmem:[%s1140_s1 + $0x78] sm:$0xff]  ;;  %720 = vmatprep.subr.mxu1 %v754_v0  ;;  %v125_v2 = vld [vmem:[%s1140_s1 + $0x70] sm:$0xff]  ;;  %v124_v3 = vld [vmem:[%s1140_s1 + $0x68] sm:$0xff] }
   0x2   :  { %596 = vmatpush3.msra.mxu0 %v126_v1  ;;  %736 = vmatpush3.msra.mxu1 %v126_v1  ;;  %v123_v4 = vld [vmem:[%s1140_s1 + $0x60] sm:$0xff]  ;;  %v122_v5 = vld [vmem:[%s1140_s1 + $0x58] sm:$0xff]  ;;  %v121_v6 = vld [vmem:[%s1140_s1 + $0x50] sm:$0xff] }
   0x3   :  { %597 = vmatprep.subr.mxu0 %v754_v0  ;;  %721 = vmatprep.subr.mxu1 %v754_v0  ;;  %v120_v7 = vld [vmem:[%s1140_s1 + $0x48] sm:$0xff]  ;;  %v119_v8 = vld [vmem:[%s1140_s1 + $0x40] sm:$0xff]  ;;  %v118_v9 = vld [vmem:[%s1140_s1 + $0x38] sm:$0xff] }
   0x4   :  { %598 = vmatpush3.msra.mxu0 %v125_v2  ;;  %737 = vmatpush3.msra.mxu1 %v125_v2  ;;  %v117_v10 = vld [vmem:[%s1140_s1 + $0x30] sm:$0xff]  ;;  %v116_v11 = vld [vmem:[%s1140_s1 + $0x28] sm:$0xff]  ;;  %v115_v12 = vld [vmem:[%s1140_s1 + $0x20] sm:$0xff] }
   0x5   :  { %599 = vmatprep.subr.mxu0 %v754_v0  ;;  %722 = vmatprep.subr.mxu1 %v754_v0  ;;  %v114_v13 = vld [vmem:[%s1140_s1 + $0x18] sm:$0xff]  ;;  %v113_v14 = vld [vmem:[%s1140_s1 + $0x10] sm:$0xff]  ;;  %v112_v15 = vld [vmem:[%s1140_s1 + $0x8] sm:$0xff] }
   0x6   :  { %600 = vmatpush3.msra.mxu0 %v124_v3  ;;  %738 = vmatpush3.msra.mxu1 %v124_v3  ;;  %v111_v16 = vld [vmem:[%s1140_s1] sm:$0xff]  ;;  %v81_v19 = vld [vmem:[%s1141_s0 + $0x8] sm:$0xff]  ;;  %v82_v21 = vld [vmem:[%s1141_s0 + $0x10] sm:$0xff] }
   0x7   :  { %601 = vmatprep.subr.mxu0 %v754_v0  ;;  %723 = vmatprep.subr.mxu1 %v754_v0  ;;  %v80_v17 = vld [vmem:[%s1141_s0] sm:$0xff]  ;;  %v97_v20 = vld [vmem:[%s1141_s0 + $0x88] sm:$0xff]  ;;  %v98_v22 = vld [vmem:[%s1141_s0 + $0x90] sm:$0xff] }
   0x8   :  { %602 = vmatpush3.msra.mxu0 %v123_v4  ;;  %739 = vmatpush3.msra.mxu1 %v123_v4  ;;  %v96_v18 = vld [vmem:[%s1141_s0 + $0x80] sm:$0xff]  ;;  %v83_v23 = vld [vmem:[%s1141_s0 + $0x18] sm:$0xff]  ;;  %v85_v27 = vld [vmem:[%s1141_s0 + $0x28] sm:$0xff] }
   0x9   :  { %603 = vmatprep.subr.mxu0 %v754_v0  ;;  %724 = vmatprep.subr.mxu1 %v754_v0  ;;  %v99_v24 = vld [vmem:[%s1141_s0 + $0x98] sm:$0xff]  ;;  %v84_v25 = vld [vmem:[%s1141_s0 + $0x20] sm:$0xff]  ;;  %v101_v28 = vld [vmem:[%s1141_s0 + $0xa8] sm:$0xff] }
   0xa   :  { %604 = vmatpush3.msra.mxu0 %v122_v5  ;;  %740 = vmatpush3.msra.mxu1 %v122_v5  ;;  %v100_v26 = vld [vmem:[%s1141_s0 + $0xa0] sm:$0xff]  ;;  %v86_v29 = vld [vmem:[%s1141_s0 + $0x30] sm:$0xff]  ;;  %v87_v31 = vld [vmem:[%s1141_s0 + $0x38] sm:$0xff] }
   0xb   :  { %605 = vmatprep.subr.mxu0 %v754_v0  ;;  %725 = vmatprep.subr.mxu1 %v754_v0  ;;  %v102_v30 = vld [vmem:[%s1141_s0 + $0xb0] sm:$0xff]  ;;  %v103_v32 = vld [vmem:[%s1141_s0 + $0xb8] sm:$0xff]  ;;  %v88_v33 = vld [vmem:[%s1141_s0 + $0x40] sm:$0xff] }
   0xc   :  { %606 = vmatpush3.msra.mxu0 %v121_v6  ;;  %741 = vmatpush3.msra.mxu1 %v121_v6  ;;  %v104_v34 = vld [vmem:[%s1141_s0 + $0xc0] sm:$0xff]  ;;  %v89_v35 = vld [vmem:[%s1141_s0 + $0x48] sm:$0xff]  ;;  %v90_v37 = vld [vmem:[%s1141_s0 + $0x50] sm:$0xff] }
   0xd   :  { %607 = vmatprep.subr.mxu0 %v754_v0  ;;  %726 = vmatprep.subr.mxu1 %v754_v0  ;;  %v105_v36 = vld [vmem:[%s1141_s0 + $0xc8] sm:$0xff]  ;;  %v106_v38 = vld [vmem:[%s1141_s0 + $0xd0] sm:$0xff]  ;;  %v91_v39 = vld [vmem:[%s1141_s0 + $0x58] sm:$0xff] }
   0xe   :  { %608 = vmatpush3.msra.mxu0 %v120_v7  ;;  %742 = vmatpush3.msra.mxu1 %v120_v7  ;;  %v107_v40 = vld [vmem:[%s1141_s0 + $0xd8] sm:$0xff]  ;;  %v92_v41 = vld [vmem:[%s1141_s0 + $0x60] sm:$0xff]  ;;  %v93_v43 = vld [vmem:[%s1141_s0 + $0x68] sm:$0xff] }
   0xf   :  { %609 = vmatprep.subr.mxu0 %v754_v0  ;;  %727 = vmatprep.subr.mxu1 %v754_v0  ;;  %v108_v42 = vld [vmem:[%s1141_s0 + $0xe0] sm:$0xff]  ;;  %v109_v44 = vld [vmem:[%s1141_s0 + $0xe8] sm:$0xff]  ;;  %v94_v45 = vld [vmem:[%s1141_s0 + $0x70] sm:$0xff] }
  0x10   :  { %610 = vmatpush3.msra.mxu0 %v119_v8  ;;  %743 = vmatpush3.msra.mxu1 %v119_v8  ;;  %v110_v46 = vld [vmem:[%s1141_s0 + $0xf0] sm:$0xff]  ;;  %v95_v47 = vld [vmem:[%s1141_s0 + $0x78] sm:$0xff]  ;;  %v1014_v48 = vld [vmem:[%s1142_s2] ss:$0 sm:$0xff] }
  0x11   :  { %611 = vmatprep.subr.mxu0 %v754_v0  ;;  %728 = vmatprep.subr.mxu1 %v754_v0 }
  0x12   :  { %612 = vmatpush3.msra.mxu0 %v118_v9  ;;  %744 = vmatpush3.msra.mxu1 %v118_v9 }
  0x13   :  { %613 = vmatprep.subr.mxu0 %v754_v0  ;;  %729 = vmatprep.subr.mxu1 %v754_v0 }
  0x14   :  { %614 = vmatpush3.msra.mxu0 %v117_v10  ;;  %745 = vmatpush3.msra.mxu1 %v117_v10 }
  0x15   :  { %615 = vmatprep.subr.mxu0 %v754_v0  ;;  %730 = vmatprep.subr.mxu1 %v754_v0 }
  0x16   :  { %616 = vmatpush3.msra.mxu0 %v116_v11  ;;  %746 = vmatpush3.msra.mxu1 %v116_v11 }
  0x17   :  { %617 = vmatprep.subr.mxu0 %v754_v0  ;;  %731 = vmatprep.subr.mxu1 %v754_v0 }
  0x18   :  { %618 = vmatpush3.msra.mxu0 %v115_v12  ;;  %747 = vmatpush3.msra.mxu1 %v115_v12 }
  0x19   :  { %619 = vmatprep.subr.mxu0 %v754_v0  ;;  %732 = vmatprep.subr.mxu1 %v754_v0 }
  0x1a   :  { %620 = vmatpush3.msra.mxu0 %v114_v13  ;;  %748 = vmatpush3.msra.mxu1 %v114_v13 }
  0x1b   :  { %621 = vmatprep.subr.mxu0 %v754_v0  ;;  %733 = vmatprep.subr.mxu1 %v754_v0 }
  0x1c   :  { %622 = vmatpush3.msra.mxu0 %v113_v14  ;;  %749 = vmatpush3.msra.mxu1 %v113_v14 }
  0x1d   :  { %623 = vmatprep.subr.mxu0 %v754_v0  ;;  %734 = vmatprep.subr.mxu1 %v754_v0 }
  0x1e   :  { %624 = vmatpush3.msra.mxu0 %v112_v15  ;;  %750 = vmatpush3.msra.mxu1 %v112_v15 }
  0x1f   :  { %625 = vmatprep.subr.mxu0 %v754_v0  ;;  %627 = vmatprep.mubr.msk.f32.mxu0 %vm755_vm0, %v754_v0 }
  0x20   :  { %626 = vmatpush3.msra.mxu0 %v111_v16  ;;  %735 = vmatprep.subr.mxu1 %v754_v0 }
  0x21   :  { %628 = vmatmul.mubr.f32.vlgmr.msra.gmra.mxu0 %v80_v17  ;;  %751 = vmatpush3.msra.mxu1 %v111_v16 }
  0x22   :  { %675 = vmatprep.mubr.msk.f32.mxu1 %vm755_vm0, %v754_v0  ;;  %630 = vmatprep.mubr.msk.f32.mxu0 %vm755_vm0, %v754_v0 }
  0x23   :  { %676 = vmatmul.mubr.f32.vlgmr.msra.gmra.mxu1 %v96_v18 }
  0x24   :  { %678 = vmatprep.mubr.msk.f32.mxu1 %vm755_vm0, %v754_v0 }
  0x25   :  { %631 = vmatmul.mubr.f32.gmra.mxu0 %v81_v19 }
  0x26   :  { %633 = vmatprep.mubr.msk.f32.mxu0 %vm755_vm0, %v754_v0 }
  0x27   :  { %679 = vmatmul.mubr.f32.gmra.mxu1 %v97_v20 }
  0x28   :  { %681 = vmatprep.mubr.msk.f32.mxu1 %vm755_vm0, %v754_v0 }
  0x29   :  { %634 = vmatmul.mubr.f32.gmra.mxu0 %v82_v21 }
  0x2a   :  { %636 = vmatprep.mubr.msk.f32.mxu0 %vm755_vm0, %v754_v0 }
  0x2b   :  { %682 = vmatmul.mubr.f32.gmra.mxu1 %v98_v22 }
  0x2c   :  { %684 = vmatprep.mubr.msk.f32.mxu1 %vm755_vm0, %v754_v0 }
  0x2d   :  { %637 = vmatmul.mubr.f32.gmra.mxu0 %v83_v23 }
  0x2e   :  { %639 = vmatprep.mubr.msk.f32.mxu0 %vm755_vm0, %v754_v0 }
  0x2f   :  { %685 = vmatmul.mubr.f32.gmra.mxu1 %v99_v24 }
  0x30   :  { %687 = vmatprep.mubr.msk.f32.mxu1 %vm755_vm0, %v754_v0 }
  0x31   :  { %640 = vmatmul.mubr.f32.gmra.mxu0 %v84_v25 }
  0x32   :  { %642 = vmatprep.mubr.msk.f32.mxu0 %vm755_vm0, %v754_v0 }
  0x33   :  { %688 = vmatmul.mubr.f32.gmra.mxu1 %v100_v26 }
  0x34   :  { %690 = vmatprep.mubr.msk.f32.mxu1 %vm755_vm0, %v754_v0 }
  0x35   :  { %643 = vmatmul.mubr.f32.gmra.mxu0 %v85_v27 }
  0x36   :  { %645 = vmatprep.mubr.msk.f32.mxu0 %vm755_vm0, %v754_v0 }
  0x37   :  { %691 = vmatmul.mubr.f32.gmra.mxu1 %v101_v28 }
  0x38   :  { %693 = vmatprep.mubr.msk.f32.mxu1 %vm755_vm0, %v754_v0 }
  0x39   :  { %646 = vmatmul.mubr.f32.gmra.mxu0 %v86_v29 }
  0x3a   :  { %648 = vmatprep.mubr.msk.f32.mxu0 %vm755_vm0, %v754_v0 }
  0x3b   :  { %694 = vmatmul.mubr.f32.gmra.mxu1 %v102_v30 }
  0x3c   :  { %696 = vmatprep.mubr.msk.f32.mxu1 %vm755_vm0, %v754_v0 }
  0x3d   :  { %649 = vmatmul.mubr.f32.gmra.mxu0 %v87_v31 }
  0x3e   :  { %651 = vmatprep.mubr.msk.f32.mxu0 %vm755_vm0, %v754_v0 }
  0x3f   :  { %697 = vmatmul.mubr.f32.gmra.mxu1 %v103_v32 }
  0x40   :  { %699 = vmatprep.mubr.msk.f32.mxu1 %vm755_vm0, %v754_v0 }
  0x41   :  { %652 = vmatmul.mubr.f32.gmra.mxu0 %v88_v33 }
  0x42   :  { %654 = vmatprep.mubr.msk.f32.mxu0 %vm755_vm0, %v754_v0 }
  0x43   :  { %700 = vmatmul.mubr.f32.gmra.mxu1 %v104_v34 }
  0x44   :  { %702 = vmatprep.mubr.msk.f32.mxu1 %vm755_vm0, %v754_v0 }
  0x45   :  { %655 = vmatmul.mubr.f32.gmra.mxu0 %v89_v35 }
  0x46   :  { %657 = vmatprep.mubr.msk.f32.mxu0 %vm755_vm0, %v754_v0 }
  0x47   :  { %703 = vmatmul.mubr.f32.gmra.mxu1 %v105_v36 }
  0x48   :  { %705 = vmatprep.mubr.msk.f32.mxu1 %vm755_vm0, %v754_v0 }
  0x49   :  { %658 = vmatmul.mubr.f32.gmra.mxu0 %v90_v37 }
  0x4a   :  { %660 = vmatprep.mubr.msk.f32.mxu0 %vm755_vm0, %v754_v0 }
  0x4b   :  { %706 = vmatmul.mubr.f32.gmra.mxu1 %v106_v38 }
  0x4c   :  { %708 = vmatprep.mubr.msk.f32.mxu1 %vm755_vm0, %v754_v0 }
  0x4d   :  { %661 = vmatmul.mubr.f32.gmra.mxu0 %v91_v39 }
  0x4e   :  { %663 = vmatprep.mubr.msk.f32.mxu0 %vm755_vm0, %v754_v0 }
  0x4f   :  { %709 = vmatmul.mubr.f32.gmra.mxu1 %v107_v40 }
  0x50   :  { %711 = vmatprep.mubr.msk.f32.mxu1 %vm755_vm0, %v754_v0 }
  0x51   :  { %664 = vmatmul.mubr.f32.gmra.mxu0 %v92_v41 }
  0x52   :  { %666 = vmatprep.mubr.msk.f32.mxu0 %vm755_vm0, %v754_v0 }
  0x53   :  { %712 = vmatmul.mubr.f32.gmra.mxu1 %v108_v42 }
  0x54   :  { %714 = vmatprep.mubr.msk.f32.mxu1 %vm755_vm0, %v754_v0 }
  0x55   :  { %667 = vmatmul.mubr.f32.gmra.mxu0 %v93_v43 }
  0x56   :  { %669 = vmatprep.mubr.msk.f32.mxu0 %vm755_vm0, %v754_v0 }
  0x57   :  { %715 = vmatmul.mubr.f32.gmra.mxu1 %v109_v44 }
  0x58   :  { %717 = vmatprep.mubr.msk.f32.mxu1 %vm755_vm0, %v754_v0 }
  0x59   :  { %670 = vmatmul.mubr.f32.gmra.mxu0 %v94_v45 }
  0x5a   :  { %672 = vmatprep.mubr.msk.f32.mxu0 %vm755_vm0, %v754_v0 }
  0x5b   :  { %718 = vmatmul.mubr.f32.gmra.mxu1 %v110_v46 }
  0x5d   :  { %673 = vmatmul.mubr.f32.gmra.mxu0 %v95_v47 }
  0xe1   :  { %v193_v49 = vpop.f32.mrf.mxu0 }
  0xe2   :  { %v450_v50 = vadd.f32 %v1014_v48, %v193_v49 }
  0xe3   :  { %v629_v51 = vpop.f32.mrf.mxu0  ;;  %v273_v52 = vpop.f32.mrf.mxu1 }
  0xe4   :  { %v481_v53 = vmax.f32 %v450_v50, 0.0  ;;  %v466_v54 = vadd.f32 %v1014_v48, %v273_v52 }
  0xe5   :  { %v198_v55 = vpop.f32.mrf.mxu0  ;;  %v677_v56 = vpop.f32.mrf.mxu1 }
  0xe6   :  { %512 = vst [vmem:[%s1143_s3] sm:$0xff] %v481_v53  ;;  %v497_v57 = vmax.f32 %v466_v54, 0.0  ;;  %v451_v58 = vadd.f32 %v1014_v48, %v198_v55 }
  0xe7   :  { %v632_v59 = vpop.f32.mrf.mxu0  ;;  %v278_v60 = vpop.f32.mrf.mxu1 }
  0xe8   :  { %528 = vst [vmem:[%s1143_s3 + $0x80] sm:$0xff] %v497_v57  ;;  %v482_v61 = vmax.f32 %v451_v58, 0.0  ;;  %v467_v62 = vadd.f32 %v1014_v48, %v278_v60 }
  0xe9   :  { %v203_v63 = vpop.f32.mrf.mxu0  ;;  %v680_v0 = vpop.f32.mrf.mxu1 }
  0xea   :  { %513 = vst [vmem:[%s1143_s3 + $0x8] sm:$0xff] %v482_v61  ;;  %v498_v1 = vmax.f32 %v467_v62, 0.0  ;;  %v452_v2 = vadd.f32 %v1014_v48, %v203_v63 }
  0xeb   :  { %v635_v3 = vpop.f32.mrf.mxu0  ;;  %v283_v4 = vpop.f32.mrf.mxu1 }
  0xec   :  { %529 = vst [vmem:[%s1143_s3 + $0x88] sm:$0xff] %v498_v1  ;;  %v483_v5 = vmax.f32 %v452_v2, 0.0  ;;  %v468_v6 = vadd.f32 %v1014_v48, %v283_v4 }
  0xed   :  { %v208_v7 = vpop.f32.mrf.mxu0  ;;  %v683_v8 = vpop.f32.mrf.mxu1 }
  0xee   :  { %514 = vst [vmem:[%s1143_s3 + $0x10] sm:$0xff] %v483_v5  ;;  %v499_v9 = vmax.f32 %v468_v6, 0.0  ;;  %v453_v10 = vadd.f32 %v1014_v48, %v208_v7 }
  0xef   :  { %v638_v11 = vpop.f32.mrf.mxu0  ;;  %v288_v12 = vpop.f32.mrf.mxu1 }
  0xf0   :  { %530 = vst [vmem:[%s1143_s3 + $0x90] sm:$0xff] %v499_v9  ;;  %v484_v13 = vmax.f32 %v453_v10, 0.0  ;;  %v469_v14 = vadd.f32 %v1014_v48, %v288_v12 }
  0xf1   :  { %v213_v15 = vpop.f32.mrf.mxu0  ;;  %v686_v16 = vpop.f32.mrf.mxu1 }
  0xf2   :  { %515 = vst [vmem:[%s1143_s3 + $0x18] sm:$0xff] %v484_v13  ;;  %v500_v17 = vmax.f32 %v469_v14, 0.0  ;;  %v454_v18 = vadd.f32 %v1014_v48, %v213_v15 }
  0xf3   :  { %v641_v19 = vpop.f32.mrf.mxu0  ;;  %v293_v20 = vpop.f32.mrf.mxu1 }
  0xf4   :  { %531 = vst [vmem:[%s1143_s3 + $0x98] sm:$0xff] %v500_v17  ;;  %v485_v21 = vmax.f32 %v454_v18, 0.0  ;;  %v470_v22 = vadd.f32 %v1014_v48, %v293_v20 }
  0xf5   :  { %v218_v23 = vpop.f32.mrf.mxu0  ;;  %v689_v24 = vpop.f32.mrf.mxu1 }
  0xf6   :  { %516 = vst [vmem:[%s1143_s3 + $0x20] sm:$0xff] %v485_v21  ;;  %v501_v25 = vmax.f32 %v470_v22, 0.0  ;;  %v455_v26 = vadd.f32 %v1014_v48, %v218_v23 }
  0xf7   :  { %v644_v27 = vpop.f32.mrf.mxu0  ;;  %v298_v28 = vpop.f32.mrf.mxu1 }
  0xf8   :  { %532 = vst [vmem:[%s1143_s3 + $0xa0] sm:$0xff] %v501_v25  ;;  %v486_v29 = vmax.f32 %v455_v26, 0.0  ;;  %v471_v30 = vadd.f32 %v1014_v48, %v298_v28 }
  0xf9   :  { %v223_v31 = vpop.f32.mrf.mxu0  ;;  %v692_v32 = vpop.f32.mrf.mxu1 }
  0xfa   :  { %517 = vst [vmem:[%s1143_s3 + $0x28] sm:$0xff] %v486_v29  ;;  %v502_v33 = vmax.f32 %v471_v30, 0.0  ;;  %v456_v34 = vadd.f32 %v1014_v48, %v223_v31 }
  0xfb   :  { %v647_v35 = vpop.f32.mrf.mxu0  ;;  %v303_v36 = vpop.f32.mrf.mxu1 }
  0xfc   :  { %533 = vst [vmem:[%s1143_s3 + $0xa8] sm:$0xff] %v502_v33  ;;  %v487_v37 = vmax.f32 %v456_v34, 0.0  ;;  %v472_v38 = vadd.f32 %v1014_v48, %v303_v36 }
  0xfd   :  { %v228_v39 = vpop.f32.mrf.mxu0  ;;  %v695_v40 = vpop.f32.mrf.mxu1 }
  0xfe   :  { %518 = vst [vmem:[%s1143_s3 + $0x30] sm:$0xff] %v487_v37  ;;  %v503_v41 = vmax.f32 %v472_v38, 0.0  ;;  %v457_v42 = vadd.f32 %v1014_v48, %v228_v39 }
  0xff   :  { %v650_v43 = vpop.f32.mrf.mxu0  ;;  %v308_v44 = vpop.f32.mrf.mxu1 }
 0x100   :  { %534 = vst [vmem:[%s1143_s3 + $0xb0] sm:$0xff] %v503_v41  ;;  %v488_v45 = vmax.f32 %v457_v42, 0.0  ;;  %v473_v46 = vadd.f32 %v1014_v48, %v308_v44 }
 0x101   :  { %v233_v47 = vpop.f32.mrf.mxu0  ;;  %v698_v49 = vpop.f32.mrf.mxu1 }
 0x102   :  { %519 = vst [vmem:[%s1143_s3 + $0x38] sm:$0xff] %v488_v45  ;;  %v504_v50 = vmax.f32 %v473_v46, 0.0  ;;  %v458_v51 = vadd.f32 %v1014_v48, %v233_v47 }
 0x103   :  { %v653_v52 = vpop.f32.mrf.mxu0  ;;  %v313_v53 = vpop.f32.mrf.mxu1 }
 0x104   :  { %535 = vst [vmem:[%s1143_s3 + $0xb8] sm:$0xff] %v504_v50  ;;  %v489_v54 = vmax.f32 %v458_v51, 0.0  ;;  %v474_v55 = vadd.f32 %v1014_v48, %v313_v53 }
 0x105   :  { %v238_v56 = vpop.f32.mrf.mxu0  ;;  %v701_v57 = vpop.f32.mrf.mxu1 }
 0x106   :  { %520 = vst [vmem:[%s1143_s3 + $0x40] sm:$0xff] %v489_v54  ;;  %v505_v58 = vmax.f32 %v474_v55, 0.0  ;;  %v459_v59 = vadd.f32 %v1014_v48, %v238_v56 }
 0x107   :  { %v656_v60 = vpop.f32.mrf.mxu0  ;;  %v318_v61 = vpop.f32.mrf.mxu1 }
 0x108   :  { %536 = vst [vmem:[%s1143_s3 + $0xc0] sm:$0xff] %v505_v58  ;;  %v490_v62 = vmax.f32 %v459_v59, 0.0  ;;  %v475_v63 = vadd.f32 %v1014_v48, %v318_v61 }
 0x109   :  { %v243_v0 = vpop.f32.mrf.mxu0  ;;  %v704_v1 = vpop.f32.mrf.mxu1 }
 0x10a   :  { %521 = vst [vmem:[%s1143_s3 + $0x48] sm:$0xff] %v490_v62  ;;  %v506_v2 = vmax.f32 %v475_v63, 0.0  ;;  %v460_v3 = vadd.f32 %v1014_v48, %v243_v0 }
 0x10b   :  { %v659_v4 = vpop.f32.mrf.mxu0  ;;  %v323_v5 = vpop.f32.mrf.mxu1 }
 0x10c   :  { %537 = vst [vmem:[%s1143_s3 + $0xc8] sm:$0xff] %v506_v2  ;;  %v491_v6 = vmax.f32 %v460_v3, 0.0  ;;  %v476_v7 = vadd.f32 %v1014_v48, %v323_v5 }
 0x10d   :  { %v248_v8 = vpop.f32.mrf.mxu0  ;;  %v707_v9 = vpop.f32.mrf.mxu1 }
 0x10e   :  { %522 = vst [vmem:[%s1143_s3 + $0x50] sm:$0xff] %v491_v6  ;;  %v507_v10 = vmax.f32 %v476_v7, 0.0  ;;  %v461_v11 = vadd.f32 %v1014_v48, %v248_v8 }
 0x10f   :  { %v662_v12 = vpop.f32.mrf.mxu0  ;;  %v328_v13 = vpop.f32.mrf.mxu1 }
 0x110   :  { %538 = vst [vmem:[%s1143_s3 + $0xd0] sm:$0xff] %v507_v10  ;;  %v492_v14 = vmax.f32 %v461_v11, 0.0  ;;  %v477_v15 = vadd.f32 %v1014_v48, %v328_v13 }
 0x111   :  { %v253_v16 = vpop.f32.mrf.mxu0  ;;  %v710_v17 = vpop.f32.mrf.mxu1 }
 0x112   :  { %523 = vst [vmem:[%s1143_s3 + $0x58] sm:$0xff] %v492_v14  ;;  %v508_v18 = vmax.f32 %v477_v15, 0.0  ;;  %v462_v19 = vadd.f32 %v1014_v48, %v253_v16 }
 0x113   :  { %v665_v20 = vpop.f32.mrf.mxu0  ;;  %v333_v21 = vpop.f32.mrf.mxu1 }
 0x114   :  { %539 = vst [vmem:[%s1143_s3 + $0xd8] sm:$0xff] %v508_v18  ;;  %v493_v22 = vmax.f32 %v462_v19, 0.0  ;;  %v478_v23 = vadd.f32 %v1014_v48, %v333_v21 }
 0x115   :  { %v258_v24 = vpop.f32.mrf.mxu0  ;;  %v713_v25 = vpop.f32.mrf.mxu1 }
 0x116   :  { %524 = vst [vmem:[%s1143_s3 + $0x60] sm:$0xff] %v493_v22  ;;  %v509_v26 = vmax.f32 %v478_v23, 0.0  ;;  %v463_v27 = vadd.f32 %v1014_v48, %v258_v24 }
 0x117   :  { %v668_v28 = vpop.f32.mrf.mxu0  ;;  %v338_v29 = vpop.f32.mrf.mxu1 }
 0x118   :  { %540 = vst [vmem:[%s1143_s3 + $0xe0] sm:$0xff] %v509_v26  ;;  %v494_v30 = vmax.f32 %v463_v27, 0.0  ;;  %v479_v31 = vadd.f32 %v1014_v48, %v338_v29 }
 0x119   :  { %v263_v32 = vpop.f32.mrf.mxu0  ;;  %v716_v33 = vpop.f32.mrf.mxu1 }
 0x11a   :  { %525 = vst [vmem:[%s1143_s3 + $0x68] sm:$0xff] %v494_v30  ;;  %v510_v34 = vmax.f32 %v479_v31, 0.0  ;;  %v464_v35 = vadd.f32 %v1014_v48, %v263_v32 }
 0x11b   :  { %v671_v36 = vpop.f32.mrf.mxu0  ;;  %v343_v37 = vpop.f32.mrf.mxu1 }
 0x11c   :  { %541 = vst [vmem:[%s1143_s3 + $0xe8] sm:$0xff] %v510_v34  ;;  %v495_v38 = vmax.f32 %v464_v35, 0.0  ;;  %v480_v39 = vadd.f32 %v1014_v48, %v343_v37 }
 0x11d   :  { %v268_v40 = vpop.f32.mrf.mxu0  ;;  %v719_v41 = vpop.f32.mrf.mxu1 }
 0x11e   :  { %526 = vst [vmem:[%s1143_s3 + $0x70] sm:$0xff] %v495_v38  ;;  %v511_v42 = vmax.f32 %v480_v39, 0.0  ;;  %v465_v43 = vadd.f32 %v1014_v48, %v268_v40 }
 0x11f   :  { %v674_v44 = vpop.f32.mrf.mxu0 }
 0x120   :  { %542 = vst [vmem:[%s1143_s3 + $0xf0] sm:$0xff] %v511_v42  ;;  %v496_v45 = vmax.f32 %v465_v43, 0.0 }
 0x122   :  { %527 = vst [vmem:[%s1143_s3 + $0x78] sm:$0xff] %v496_v45 }

// kernel: encoder_forward.5
= control target key start
LH: loop header
LB: loop body
LE: loop exit
PB: predicated region body
PF: predicated region fallthrough
CT: control target
= control target key end

     0   :  { %s895_s18 = smov 0   ;;  %s897_s19 = smov 0   ;;  %s1063_s0 = inlined_call_operand.vmem [shape: f32[8,1024], index: 0, kind: input, shape index: {}]   ;;  %s1064_s1 = inlined_call_operand.vmem [shape: f32[1024,128], index: 1, kind: input, shape index: {}]   ;;  %s1065_s2 = inlined_call_operand.vmem [shape: f32[1,128], index: 2, kind: input, shape index: {}]   ;;  %s1066_s3 = inlined_call_operand.vmem [shape: f32[128,128], index: 3, kind: input, shape index: {}]   ;;  %s1067_s4 = inlined_call_operand.vmem [shape: f32[1,128], index: 4, kind: input, shape index: {}]   ;;  %s1068_s5 = inlined_call_operand.vmem [shape: f32[8,128], index: 5, kind: output, shape index: {}]  }
   0x1   :  { %s899_s20 = smov 0  }
   0x2 LB: > { %s24_s21 = sadd.s32 1, %s856_s19  ;;  %p677_p0 = scmp.ge.s32.totalorder %s860_s20, 1  ;;  %s860_s20 = sphi %s899_s20, %s15_s20   ;;  %s856_s19 = sphi %s897_s19, %s1070_s19   ;;  %s852_s18 = sphi %s895_s18, %s1069_s18  }
   0x3   : > { %p25_p1 = scmp.ge.s32.totalorder %s24_s21, 2  ;;  %p217_p2 = scmp.lt.s32.totalorder %s860_s20, 3 }
   0x5   : > { %s1072_s21 = smov (%p25_p1, %s24_s21), 0  ;;  %p218_p3 = pnand %p677_p0, %p217_p2 }
   0x6   : > { %s678_s22 = sshll.u32 (!%p218_p3), %s852_s18, 2  ;;  %s680_s23 = sshll.u32 (!%p218_p3), %s852_s18, 6 }
   0x7   : > { %221 = sbr.rel (%p218_p3) target bundleno = 489 (0x1e9), region = 40  ;;  %p256_p4 = scmp.lt.s32.totalorder (!%p218_p3), %s678_s22, 7 }
   0x8   : > { %p264_p5 = scmp.lt.s32.totalorder (!%p218_p3), %s680_s23, 127  ;;  %p682_p6 = scmp.ne.s32.totalorder (!%p218_p3), %s852_s18, 0 }
   0xc   : > { %s1074_s22 = smov (!%p256_p4, %s678_s22), 7  ;;  %s1076_s23 = smov (!%p264_p5, %s680_s23), 127 }
   0xd   : > { %s679_s24 = sshll.u32 %s1074_s22, 3  ;;  %s681_s28 = sshll.u32 %s1076_s23, 3 }
   0xe   : > { %s920_s27 = scalar_lea.vmem %s1063_s0, %s679_s24  ;;  %s925_s6 = scalar_lea.vmem %s1064_s1, %s681_s28 }
   0xf   : > { %276 = sbr.rel (%p682_p6) target bundleno = 22 (0x16), region = 44 }
  0x14   : > { %v862_v0 = vmov 0.0  }
  0x15   : > { %277 = vst [vmem:[#allocation2] sm:$0xff] %v862_v0 }
  0x16 PF: > { %v314_v1 = vld [vmem:[%s925_s6 + $0xf8] sm:$0xff]  ;;  %v313_v5 = vld [vmem:[%s925_s6 + $0xf0] sm:$0xff]  ;;  %v312_v9 = vld [vmem:[%s925_s6 + $0xe8] sm:$0xff]  ;;  %p683_p7 = scmp.ne.s32.totalorder %s852_s18, 1 }
  0x17   : > { %v346_v2 = vld [vmem:[%s925_s6 + $0x1f8] sm:$0xff]  ;;  %689 = vmatprep.subr.mxu0 %v314_v1  ;;  %v345_v6 = vld [vmem:[%s925_s6 + $0x1f0] sm:$0xff]  ;;  %v344_v10 = vld [vmem:[%s925_s6 + $0x1e8] sm:$0xff] }
  0x18   : > { %v298_v3 = vld [vmem:[%s925_s6 + $0x78] sm:$0xff]  ;;  %724 = vmatprep.subr.mxu1 %v346_v2  ;;  %v297_v7 = vld [vmem:[%s925_s6 + $0x70] sm:$0xff]  ;;  %v296_v11 = vld [vmem:[%s925_s6 + $0x68] sm:$0xff] }
  0x19   : > { %v330_v4 = vld [vmem:[%s925_s6 + $0x178] sm:$0xff]  ;;  %690 = vmatpush3.msra.mxu0 %v298_v3  ;;  %v329_v8 = vld [vmem:[%s925_s6 + $0x170] sm:$0xff]  ;;  %v328_v12 = vld [vmem:[%s925_s6 + $0x168] sm:$0xff] }
  0x1a   : > { %725 = vmatpush3.msra.mxu1 %v330_v4  ;;  %691 = vmatprep.subr.mxu0 %v313_v5  ;;  %v311_v13 = vld [vmem:[%s925_s6 + $0xe0] sm:$0xff]  ;;  %v310_v17 = vld [vmem:[%s925_s6 + $0xd8] sm:$0xff]  ;;  %v309_v21 = vld [vmem:[%s925_s6 + $0xd0] sm:$0xff] }
  0x1b   : > { %726 = vmatprep.subr.mxu1 %v345_v6  ;;  %692 = vmatpush3.msra.mxu0 %v297_v7  ;;  %v343_v14 = vld [vmem:[%s925_s6 + $0x1e0] sm:$0xff]  ;;  %v342_v18 = vld [vmem:[%s925_s6 + $0x1d8] sm:$0xff]  ;;  %v341_v22 = vld [vmem:[%s925_s6 + $0x1d0] sm:$0xff] }
  0x1c   : > { %727 = vmatpush3.msra.mxu1 %v329_v8  ;;  %693 = vmatprep.subr.mxu0 %v312_v9  ;;  %v295_v15 = vld [vmem:[%s925_s6 + $0x60] sm:$0xff]  ;;  %v294_v19 = vld [vmem:[%s925_s6 + $0x58] sm:$0xff]  ;;  %v293_v23 = vld [vmem:[%s925_s6 + $0x50] sm:$0xff] }
  0x1d   : > { %728 = vmatprep.subr.mxu1 %v344_v10  ;;  %v327_v16 = vld [vmem:[%s925_s6 + $0x160] sm:$0xff]  ;;  %694 = vmatpush3.msra.mxu0 %v296_v11  ;;  %v326_v20 = vld [vmem:[%s925_s6 + $0x158] sm:$0xff]  ;;  %v325_v24 = vld [vmem:[%s925_s6 + $0x150] sm:$0xff] }
  0x1e   : > { %729 = vmatpush3.msra.mxu1 %v328_v12  ;;  %695 = vmatprep.subr.mxu0 %v311_v13  ;;  %v308_v25 = vld [vmem:[%s925_s6 + $0xc8] sm:$0xff]  ;;  %v307_v29 = vld [vmem:[%s925_s6 + $0xc0] sm:$0xff]  ;;  %v306_v33 = vld [vmem:[%s925_s6 + $0xb8] sm:$0xff] }
  0x1f   : > { %730 = vmatprep.subr.mxu1 %v343_v14  ;;  %696 = vmatpush3.msra.mxu0 %v295_v15  ;;  %v340_v26 = vld [vmem:[%s925_s6 + $0x1c8] sm:$0xff]  ;;  %v339_v30 = vld [vmem:[%s925_s6 + $0x1c0] sm:$0xff]  ;;  %v338_v34 = vld [vmem:[%s925_s6 + $0x1b8] sm:$0xff] }
  0x20   : > { %731 = vmatpush3.msra.mxu1 %v327_v16  ;;  %697 = vmatprep.subr.mxu0 %v310_v17  ;;  %v292_v27 = vld [vmem:[%s925_s6 + $0x48] sm:$0xff]  ;;  %v291_v31 = vld [vmem:[%s925_s6 + $0x40] sm:$0xff]  ;;  %v290_v35 = vld [vmem:[%s925_s6 + $0x38] sm:$0xff] }
  0x21   : > { %732 = vmatprep.subr.mxu1 %v342_v18  ;;  %698 = vmatpush3.msra.mxu0 %v294_v19  ;;  %v324_v28 = vld [vmem:[%s925_s6 + $0x148] sm:$0xff]  ;;  %v323_v32 = vld [vmem:[%s925_s6 + $0x140] sm:$0xff]  ;;  %v322_v36 = vld [vmem:[%s925_s6 + $0x138] sm:$0xff] }
  0x22   : > { %733 = vmatpush3.msra.mxu1 %v326_v20  ;;  %699 = vmatprep.subr.mxu0 %v309_v21  ;;  %v305_v37 = vld [vmem:[%s925_s6 + $0xb0] sm:$0xff]  ;;  %v304_v41 = vld [vmem:[%s925_s6 + $0xa8] sm:$0xff]  ;;  %v303_v45 = vld [vmem:[%s925_s6 + $0xa0] sm:$0xff] }
  0x23   : > { %734 = vmatprep.subr.mxu1 %v341_v22  ;;  %700 = vmatpush3.msra.mxu0 %v293_v23  ;;  %v337_v38 = vld [vmem:[%s925_s6 + $0x1b0] sm:$0xff]  ;;  %v336_v42 = vld [vmem:[%s925_s6 + $0x1a8] sm:$0xff]  ;;  %v335_v46 = vld [vmem:[%s925_s6 + $0x1a0] sm:$0xff] }
  0x24   : > { %735 = vmatpush3.msra.mxu1 %v325_v24  ;;  %701 = vmatprep.subr.mxu0 %v308_v25  ;;  %v289_v39 = vld [vmem:[%s925_s6 + $0x30] sm:$0xff]  ;;  %v288_v43 = vld [vmem:[%s925_s6 + $0x28] sm:$0xff]  ;;  %v287_v47 = vld [vmem:[%s925_s6 + $0x20] sm:$0xff] }
  0x25   : > { %736 = vmatprep.subr.mxu1 %v340_v26  ;;  %702 = vmatpush3.msra.mxu0 %v292_v27  ;;  %v321_v40 = vld [vmem:[%s925_s6 + $0x130] sm:$0xff]  ;;  %v320_v44 = vld [vmem:[%s925_s6 + $0x128] sm:$0xff]  ;;  %v319_v48 = vld [vmem:[%s925_s6 + $0x120] sm:$0xff] }
  0x26   : > { %737 = vmatpush3.msra.mxu1 %v324_v28  ;;  %703 = vmatprep.subr.mxu0 %v307_v29  ;;  %v302_v49 = vld [vmem:[%s925_s6 + $0x98] sm:$0xff]  ;;  %v301_v53 = vld [vmem:[%s925_s6 + $0x90] sm:$0xff]  ;;  %v300_v57 = vld [vmem:[%s925_s6 + $0x88] sm:$0xff] }
  0x27   : > { %738 = vmatprep.subr.mxu1 %v339_v30  ;;  %704 = vmatpush3.msra.mxu0 %v291_v31  ;;  %v334_v50 = vld [vmem:[%s925_s6 + $0x198] sm:$0xff]  ;;  %v333_v54 = vld [vmem:[%s925_s6 + $0x190] sm:$0xff]  ;;  %v332_v58 = vld [vmem:[%s925_s6 + $0x188] sm:$0xff] }
  0x28   : > { %739 = vmatpush3.msra.mxu1 %v323_v32  ;;  %705 = vmatprep.subr.mxu0 %v306_v33  ;;  %v286_v51 = vld [vmem:[%s925_s6 + $0x18] sm:$0xff]  ;;  %v285_v55 = vld [vmem:[%s925_s6 + $0x10] sm:$0xff]  ;;  %v284_v59 = vld [vmem:[%s925_s6 + $0x8] sm:$0xff] }
  0x29   : > { %740 = vmatprep.subr.mxu1 %v338_v34  ;;  %706 = vmatpush3.msra.mxu0 %v290_v35  ;;  %v318_v52 = vld [vmem:[%s925_s6 + $0x118] sm:$0xff]  ;;  %v317_v56 = vld [vmem:[%s925_s6 + $0x110] sm:$0xff]  ;;  %v316_v60 = vld [vmem:[%s925_s6 + $0x108] sm:$0xff] }
  0x2a   : > { %741 = vmatpush3.msra.mxu1 %v322_v36  ;;  %707 = vmatprep.subr.mxu0 %v305_v37  ;;  %v299_v61 = vld [vmem:[%s925_s6 + $0x80] sm:$0xff]  ;;  %v280_v0 = vld [vmem:[%s920_s27 + $0x8] sm:$0xff]  ;;  %v282_v2 = vld [vmem:[%s920_s27 + $0x18] sm:$0xff] }
  0x2b   : > { %742 = vmatprep.subr.mxu1 %v337_v38  ;;  %708 = vmatpush3.msra.mxu0 %v289_v39  ;;  %v331_v62 = vld [vmem:[%s925_s6 + $0x180] sm:$0xff]  ;;  %v281_v4 = vld [vmem:[%s920_s27 + $0x10] sm:$0xff] }
  0x2c   : > { %743 = vmatpush3.msra.mxu1 %v321_v40  ;;  %709 = vmatprep.subr.mxu0 %v304_v41  ;;  %v283_v63 = vld [vmem:[%s925_s6] sm:$0xff] }
  0x2d   : > { %744 = vmatprep.subr.mxu1 %v336_v42  ;;  %710 = vmatpush3.msra.mxu0 %v288_v43  ;;  %v315_v1 = vld [vmem:[%s925_s6 + $0x100] sm:$0xff] }
  0x2e   : > { %745 = vmatpush3.msra.mxu1 %v320_v44  ;;  %711 = vmatprep.subr.mxu0 %v303_v45  ;;  %v279_v3 = vld [vmem:[%s920_s27] sm:$0xff] }
  0x2f   : > { %746 = vmatprep.subr.mxu1 %v335_v46  ;;  %712 = vmatpush3.msra.mxu0 %v287_v47  ;;  %v278_v11 = vld [vmem:[#allocation2] sm:$0xff] }
  0x30   : > { %747 = vmatpush3.msra.mxu1 %v319_v48  ;;  %713 = vmatprep.subr.mxu0 %v302_v49 }
  0x31   : > { %748 = vmatprep.subr.mxu1 %v334_v50  ;;  %714 = vmatpush3.msra.mxu0 %v286_v51 }
  0x32   : > { %749 = vmatpush3.msra.mxu1 %v318_v52  ;;  %715 = vmatprep.subr.mxu0 %v301_v53 }
  0x33   : > { %750 = vmatprep.subr.mxu1 %v333_v54  ;;  %716 = vmatpush3.msra.mxu0 %v285_v55 }
  0x34   : > { %751 = vmatpush3.msra.mxu1 %v317_v56  ;;  %717 = vmatprep.subr.mxu0 %v300_v57 }
  0x35   : > { %752 = vmatprep.subr.mxu1 %v332_v58  ;;  %718 = vmatpush3.msra.mxu0 %v284_v59 }
  0x36   : > { %753 = vmatpush3.msra.mxu1 %v316_v60  ;;  %719 = vmatprep.subr.mxu0 %v299_v61 }
  0x37   : > { %754 = vmatprep.subr.mxu1 %v331_v62  ;;  %720 = vmatpush3.msra.mxu0 %v283_v63 }
  0x38   : > { %411 = vmatprep.mubr.f32.mxu0 %v280_v0  ;;  %755 = vmatpush3.msra.mxu1 %v315_v1 }
  0x39   : > { %481 = vmatprep.mubr.f32.mxu1 %v282_v2  ;;  %412 = vmatmul.mubr.f32.vlgmr.msra.gmra.mxu0 %v279_v3 }
  0x3a   : > { %482 = vmatmul.mubr.f32.vlgmr.msra.gmra.mxu1 %v281_v4 }
  0xf9   : > { %v721_v5 = vpop.f32.mrf.mxu0 }
  0xfa   : > { %v756_v6 = vpop.f32.mrf.mxu1 }
  0xfb   : > { %v722_v7 = vpop.f32.mrf.mxu0 }
  0xfc   : > { %v757_v8 = vpop.f32.mrf.mxu1  ;;  %v723_v9 = vadd.f32 %v722_v7, %v721_v5 }
  0xfd   : > { %v758_v10 = vadd.f32 %v757_v8, %v756_v6 }
  0xff   : > { %v484_v12 = vadd.f32 %v758_v10, %v723_v9  ;;  %492 = sbr.rel (%p683_p7) target bundleno = 489 (0x1e9), region = 48 }
 0x101   : > { %v487_v13 = vadd.f32 %v484_v12, %v278_v11 }
 0x103   : > { %488 = vst [vmem:[#allocation2] sm:$0xff] %v487_v13 }
 0x104   : > { %v518_v14 = vld [vmem:[%s1066_s3 + $0x78] sm:$0xff]  ;;  %v863_v15 = vmov 0.0   ;;  %v517_v16 = vld [vmem:[%s1066_s3 + $0x70] sm:$0xff]  ;;  %vm864_vm0 = vmmov 0   ;;  %v516_v17 = vld [vmem:[%s1066_s3 + $0x68] sm:$0xff] }
 0x105   : > { %776 = vmatprep.subr.mxu0 %v863_v15  ;;  %808 = vmatprep.mubr.msk.f32.mxu0 %vm864_vm0, %v863_v15  ;;  %v515_v18 = vld [vmem:[%s1066_s3 + $0x60] sm:$0xff]  ;;  %v514_v19 = vld [vmem:[%s1066_s3 + $0x58] sm:$0xff]  ;;  %v513_v20 = vld [vmem:[%s1066_s3 + $0x50] sm:$0xff] }
 0x106   : > { %777 = vmatpush3.msra.mxu0 %v518_v14  ;;  %v512_v21 = vld [vmem:[%s1066_s3 + $0x48] sm:$0xff]  ;;  %v511_v22 = vld [vmem:[%s1066_s3 + $0x40] sm:$0xff]  ;;  %v510_v23 = vld [vmem:[%s1066_s3 + $0x38] sm:$0xff] }
 0x107   : > { %778 = vmatprep.subr.mxu0 %v863_v15  ;;  %v509_v24 = vld [vmem:[%s1066_s3 + $0x30] sm:$0xff]  ;;  %v508_v25 = vld [vmem:[%s1066_s3 + $0x28] sm:$0xff]  ;;  %v507_v26 = vld [vmem:[%s1066_s3 + $0x20] sm:$0xff] }
 0x108   : > { %779 = vmatpush3.msra.mxu0 %v517_v16  ;;  %v684_v28 = vld [vmem:[%s1065_s2] ss:$0 sm:$0xff]  ;;  %v506_v29 = vld [vmem:[%s1066_s3 + $0x18] sm:$0xff]  ;;  %v505_v30 = vld [vmem:[%s1066_s3 + $0x10] sm:$0xff] }
 0x109   : > { %780 = vmatprep.subr.mxu0 %v863_v15  ;;  %v504_v32 = vld [vmem:[%s1066_s3 + $0x8] sm:$0xff]  ;;  %v503_v33 = vld [vmem:[%s1066_s3] sm:$0xff] }
 0x10a   : > { %781 = vmatpush3.msra.mxu0 %v516_v17  ;;  %v493_v27 = vld [vmem:[#allocation2] sm:$0xff] }
 0x10b   : > { %782 = vmatprep.subr.mxu0 %v863_v15  ;;  %v501_v31 = vadd.f32 %v684_v28, %v493_v27  ;;  %v685_v35 = vld [vmem:[%s1067_s4] ss:$0 sm:$0xff] }
 0x10c   : > { %783 = vmatpush3.msra.mxu0 %v515_v18 }
 0x10d   : > { %784 = vmatprep.subr.mxu0 %v863_v15  ;;  %v502_v34 = vmax.f32 %v501_v31, 0.0 }
 0x10e   : > { %785 = vmatpush3.msra.mxu0 %v514_v19 }
 0x10f   : > { %786 = vmatprep.subr.mxu0 %v863_v15 }
 0x110   : > { %787 = vmatpush3.msra.mxu0 %v513_v20 }
 0x111   : > { %788 = vmatprep.subr.mxu0 %v863_v15 }
 0x112   : > { %789 = vmatpush3.msra.mxu0 %v512_v21 }
 0x113   : > { %790 = vmatprep.subr.mxu0 %v863_v15 }
 0x114   : > { %791 = vmatpush3.msra.mxu0 %v511_v22 }
 0x115   : > { %792 = vmatprep.subr.mxu0 %v863_v15 }
 0x116   : > { %793 = vmatpush3.msra.mxu0 %v510_v23 }
 0x117   : > { %794 = vmatprep.subr.mxu0 %v863_v15 }
 0x118   : > { %795 = vmatpush3.msra.mxu0 %v509_v24 }
 0x119   : > { %796 = vmatprep.subr.mxu0 %v863_v15 }
 0x11a   : > { %797 = vmatpush3.msra.mxu0 %v508_v25 }
 0x11b   : > { %798 = vmatprep.subr.mxu0 %v863_v15 }
 0x11c   : > { %799 = vmatpush3.msra.mxu0 %v507_v26 }
 0x11d   : > { %800 = vmatprep.subr.mxu0 %v863_v15 }
 0x11e   : > { %801 = vmatpush3.msra.mxu0 %v506_v29 }
 0x11f   : > { %802 = vmatprep.subr.mxu0 %v863_v15 }
 0x120   : > { %803 = vmatpush3.msra.mxu0 %v505_v30 }
 0x121   : > { %804 = vmatprep.subr.mxu0 %v863_v15 }
 0x122   : > { %805 = vmatpush3.msra.mxu0 %v504_v32 }
 0x123   : > { %806 = vmatprep.subr.mxu0 %v863_v15 }
 0x124   : > { %807 = vmatpush3.msra.mxu0 %v503_v33 }
 0x125   : > { %809 = vmatmul.mubr.f32.vlgmr.msra.gmra.mxu0 %v502_v34 }
 0x1e5   : > { %v592_v36 = vpop.f32.mrf.mxu0 }
 0x1e6   : > { %v593_v37 = vadd.f32 %v685_v35, %v592_v36 }
 0x1e7   : > { %v810_v38 = vpop.f32.mrf.mxu0 }
 0x1e8   : > { %596 = vst [vmem:[%s1068_s5] sm:$0xff] %v593_v37 }
 0x1e9 PF: > { %s15_s20 = sadd.s32 1, %s860_s20   ;;  %s1069_s18 = smov %s856_s19 }
 0x1ea   : > { %p12_p8 = scmp.ge.s32.totalorder %s15_s20, 4   ;;  %s1070_s19 = smov %s1072_s21 }
 0x1ec   :  { %14 = sbr.rel (!%p12_p8) target bundleno = 2 (0x2), region = 81 }

</bundles_post_ra>
